<compile_context>
chip_gen: v7x
topology: tpu7x:2x2x1
jax: 0.10.0
libtpu: 0.0.40
codegen_flags: <defaults>
</compile_context>

<pallas_src>
import functools

import jax
import jax.numpy as jnp
import numpy as np
from jax.experimental import pallas as pl
from jax.experimental.pallas import tpu as pltpu

BN_EPS = 1e-5
LANE = 128


def _round_up(x, m):
    return (x + m - 1) // m * m


def _nbytes(shape, dtype):
    return int(np.prod(shape)) * np.dtype(dtype).itemsize


def _compiler_params(vmem_bytes_needed):
    # Recomputed per pallas_call from the actual block sizes (floor 32 MiB, cap 96 MiB).
    limit = int(min(max(2 * vmem_bytes_needed, 32 << 20), 96 << 20))
    return pltpu.CompilerParams(
        dimension_semantics=("parallel",),
        vmem_limit_bytes=limit,
    )


# ---------------------------------------------------------------------------
# Kernels
# ---------------------------------------------------------------------------
def _conv1_stats_kernel(x_ref, w_ref, conv_ref, stats_ref, *, stride, ho, wo):
    """Stage 1: strided 3x3 conv (9 in-kernel taps) + per-image partial BN stats.

    x_ref:     (1, s*s, Hq, Wq, Cin) f32  stride-phase planes of the zero-padded input
    w_ref:     (9, Cin, Cpad)        bf16 conv1 weights, one (Cin, Cpad) matrix per tap
    conv_ref:  (1, Ho, Wo, Cpad)     bf16 conv output
    stats_ref: (1, 2, Cpad)          f32  [sum, centered sum-of-squares] over Ho*Wo rows
    """
    s = stride
    cpad = conv_ref.shape[-1]
    acc = jnp.zeros((ho * wo, cpad), jnp.float32)
    for kh in range(3):
        for kw in range(3):
            ph = (kh % s) * s + (kw % s)          # phase plane holding this tap
            tap = x_ref[0, ph, pl.ds(kh // s, ho), pl.ds(kw // s, wo), :]
            tap = tap.reshape(ho * wo, tap.shape[-1]).astype(jnp.bfloat16)
            acc += jnp.dot(tap, w_ref[kh * 3 + kw],
                           preferred_element_type=jnp.float32)
    conv_ref[0] = acc.reshape(ho, wo, cpad).astype(conv_ref.dtype)

    # Shifted-moment partials (VPU work riding next to the MXU), direct sub-stores.
    inv_cnt = 1.0 / float(ho * wo)
    col_sum = jnp.sum(acc, axis=0, keepdims=True)               # (1, Cpad)
    centered = acc - col_sum * inv_cnt
    stats_ref[0, 0:1, :] = col_sum
    stats_ref[0, 1:2, :] = jnp.sum(centered * centered, axis=0, keepdims=True)


def _norm_relu_conv2_stats_kernel(conv1_ref, scale_ref, shift_ref, w_ref,
                                  conv2_ref, stats_ref, pad_ref, *, ho, wo):
    """Stage 2 (fused): y1 = relu(BN1(conv1)); conv2(y1) + per-image partial BN stats.

    conv1_ref: (1, Ho, Wo, Cpad)      bf16
    scale_ref/shift_ref: (1, Cpad)    f32  folded BN1 scale/shift (global batch stats)
    w_ref:     (9, Cpad, Cpad)        bf16 conv2 weights per tap
    conv2_ref: (1, Ho, Wo, Cpad)      bf16
    stats_ref: (1, 2, Cpad)           f32
    pad_ref:   (Ho+2, Wo+2, Cpad)     f32 VMEM scratch: y1 with a zero halo (never in HBM)
    """
    cpad = conv2_ref.shape[-1]
    # Re-zero every step (scratch may be per-core under megacore partitioning).
    pad_ref[...] = jnp.zeros_like(pad_ref)
    y = conv1_ref[0].astype(jnp.float32) * scale_ref[...] + shift_ref[...]
    pad_ref[pl.ds(1, ho), pl.ds(1, wo), :] = jnp.maximum(y, 0.0)

    acc = jnp.zeros((ho * wo, cpad), jnp.float32)
    for kh in range(3):
        for kw in range(3):
            tap = pad_ref[pl.ds(kh, ho), pl.ds(kw, wo), :]
            tap = tap.reshape(ho * wo, cpad).astype(jnp.bfloat16)
            acc += jnp.dot(tap, w_ref[kh * 3 + kw],
                           preferred_element_type=jnp.float32)
    conv2_ref[0] = acc.reshape(ho, wo, cpad).astype(conv2_ref.dtype)

    inv_cnt = 1.0 / float(ho * wo)
    col_sum = jnp.sum(acc, axis=0, keepdims=True)
    centered = acc - col_sum * inv_cnt
    stats_ref[0, 0:1, :] = col_sum
    stats_ref[0, 1:2, :] = jnp.sum(centered * centered, axis=0, keepdims=True)


def _norm_skip_relu_kernel(conv2_ref, scale_ref, shift_ref, skip_ref, out_ref):
    """Stage 3: out = relu(BN2(conv2) + skip).  conv2/skip are bf16, math in f32."""
    y = (conv2_ref[0].astype(jnp.float32) * scale_ref[...] + shift_ref[...]
         + skip_ref[0].astype(jnp.float32))
    out_ref[0] = jnp.maximum(y, 0.0).astype(out_ref.dtype)


# ---------------------------------------------------------------------------
# pallas_call wrappers (grid = one step per image)
# ---------------------------------------------------------------------------
def _conv1_stats(phases, w_taps, ho, wo, cpad, stride):
    n, s2, hq, wq, cin = phases.shape
    kern = functools.partial(_conv1_stats_kernel, stride=stride, ho=ho, wo=wo)
    vmem = (2 * _nbytes((1, s2, hq, wq, cin), jnp.float32)
            + 2 * _nbytes((9, cin, cpad), jnp.bfloat16)
            + 2 * _nbytes((1, ho, wo, cpad), jnp.bfloat16)
            + 2 * _nbytes((1, 2, cpad), jnp.float32)
            + 2 * _nbytes((ho * wo, cpad), jnp.float32))        # f32 accumulator + temps
    return pl.pallas_call(
        kern,
        out_shape=(jax.ShapeDtypeStruct((n, ho, wo, cpad), jnp.bfloat16),
                   jax.ShapeDtypeStruct((n, 2, cpad), jnp.float32)),
        grid=(n,),
        in_specs=[pl.BlockSpec((1, s2, hq, wq, cin), lambda i: (i, 0, 0, 0, 0)),
                  pl.BlockSpec((9, cin, cpad), lambda i: (0, 0, 0))],
        out_specs=(pl.BlockSpec((1, ho, wo, cpad), lambda i: (i, 0, 0, 0)),
                   pl.BlockSpec((1, 2, cpad), lambda i: (i, 0, 0))),
        compiler_params=_compiler_params(vmem),
    )(phases, w_taps)


def _norm_relu_conv2_stats(conv1, scale1, shift1, w_taps, ho, wo, cpad):
    n = conv1.shape[0]
    kern = functools.partial(_norm_relu_conv2_stats_kernel, ho=ho, wo=wo)
    vmem = (4 * _nbytes((1, ho, wo, cpad), jnp.bfloat16)        # conv1 in + conv2 out (x2)
            + 2 * _nbytes((9, cpad, cpad), jnp.bfloat16)
            + 4 * _nbytes((1, cpad), jnp.float32)
            + 2 * _nbytes((1, 2, cpad), jnp.float32)
            + _nbytes((ho + 2, wo + 2, cpad), jnp.float32)      # halo scratch
            + 2 * _nbytes((ho * wo, cpad), jnp.float32))        # f32 accumulator + temps
    return pl.pallas_call(
        kern,
        out_shape=(jax.ShapeDtypeStruct((n, ho, wo, cpad), jnp.bfloat16),
                   jax.ShapeDtypeStruct((n, 2, cpad), jnp.float32)),
        grid=(n,),
        in_specs=[pl.BlockSpec((1, ho, wo, cpad), lambda i: (i, 0, 0, 0)),
                  pl.BlockSpec((1, cpad), lambda i: (0, 0)),
                  pl.BlockSpec((1, cpad), lambda i: (0, 0)),
                  pl.BlockSpec((9, cpad, cpad), lambda i: (0, 0, 0))],
        out_specs=(pl.BlockSpec((1, ho, wo, cpad), lambda i: (i, 0, 0, 0)),
                   pl.BlockSpec((1, 2, cpad), lambda i: (i, 0, 0))),
        scratch_shapes=[pltpu.VMEM((ho + 2, wo + 2, cpad), jnp.float32)],
        compiler_params=_compiler_params(vmem),
    )(conv1, scale1, shift1, w_taps)


def _norm_skip_relu(conv2, scale2, shift2, skip, ho, wo, cpad):
    n = conv2.shape[0]
    vmem = (4 * _nbytes((1, ho, wo, cpad), jnp.bfloat16)
            + 2 * _nbytes((1, ho, wo, cpad), jnp.float32)
            + 4 * _nbytes((1, cpad), jnp.float32))
    return pl.pallas_call(
        _norm_skip_relu_kernel,
        out_shape=jax.ShapeDtypeStruct((n, ho, wo, cpad), jnp.float32),
        grid=(n,),
        in_specs=[pl.BlockSpec((1, ho, wo, cpad), lambda i: (i, 0, 0, 0)),
                  pl.BlockSpec((1, cpad), lambda i: (0, 0)),
                  pl.BlockSpec((1, cpad), lambda i: (0, 0)),
                  pl.BlockSpec((1, ho, wo, cpad), lambda i: (i, 0, 0, 0))],
        out_specs=pl.BlockSpec((1, ho, wo, cpad), lambda i: (i, 0, 0, 0)),
        compiler_params=_compiler_params(vmem),
    )(conv2, scale2, shift2, skip)


# ---------------------------------------------------------------------------
# BN finalize (global training-mode stats from per-image shifted moments)
# ---------------------------------------------------------------------------
def _bn_scale_shift(stats, gamma_pad, beta_pad, count_per_tile, m_total):
    tile_sum = stats[:, 0, :]                 # (G, Cpad)
    tile_ssc = stats[:, 1, :]                 # (G, Cpad), centered within the tile
    mu_tile = tile_sum / count_per_tile
    mu = jnp.sum(tile_sum, axis=0) / m_total
    var = (jnp.sum(tile_ssc, axis=0)
           + count_per_tile * jnp.sum((mu_tile - mu) ** 2, axis=0)) / m_total
    var = jnp.maximum(var, 0.0)               # biased variance, as in BN training mode
    scale = gamma_pad * jax.lax.rsqrt(var + BN_EPS)
    shift = beta_pad - mu * scale
    return scale.reshape(1, -1), shift.reshape(1, -1)


# ---------------------------------------------------------------------------
# Forward pass
# ---------------------------------------------------------------------------
def residual_block_forward(x_nchw, w1, w2, gamma, beta, stride):
    """ResidualBlock forward.  x_nchw: (N, Cin, H, W) -> (N, Cout, Ho, Wo), f32."""
    n, cin, h, w = x_nchw.shape
    cout = w1.shape[0]
    # 128-lane alignment only: extra channel padding is pure HBM traffic in this
    # mem-bound block (256-wide MXU alignment only matters once compute-bound).
    cpad = _round_up(cout, LANE)
    s = stride

    x_nhwc = jnp.transpose(x_nchw, (0, 2, 3, 1)).astype(jnp.float32)

    ho = (h - 1) // s + 1
    wo = (w - 1) // s + 1

    # Stride-phase decomposition of the zero-padded input (total bytes == padded input):
    #   phases[n, ph*s+pw, r, c, :] = xpad[n, s*r+ph, s*c+pw, :]
    # so tap (kh, kw) of the strided conv is phases[:, (kh%s)*s+(kw%s), kh//s:, kw//s:, :]
    # -- an unstrided static slice.  Kept f32 so all in-kernel halo slices stay on plain
    # 32-bit sublane loads (the MXU cast to bf16 happens in-register).
    hq = max(ho + 2 // s, -(-(h + 2) // s))
    wq = max(wo + 2 // s, -(-(w + 2) // s))
    xpad = jnp.pad(x_nhwc, ((0, 0), (1, s * hq - h - 1), (1, s * wq - w - 1), (0, 0)))
    phases = xpad.reshape(n, hq, s, wq, s, cin)
    phases = jnp.transpose(phases, (0, 2, 4, 1, 3, 5)).reshape(n, s * s, hq, wq, cin)

    # Conv weights: (Cout, Cin, 3, 3) -> (9, Cin, Cpad) per-tap matrices, bf16 for the MXU.
    w1_taps = jnp.transpose(w1, (2, 3, 1, 0)).reshape(9, cin, cout)
    w1_taps = jnp.pad(w1_taps, ((0, 0), (0, 0), (0, cpad - cout))).astype(jnp.bfloat16)
    w2_taps = jnp.transpose(w2, (2, 3, 1, 0)).reshape(9, cout, cout)
    w2_taps = jnp.pad(w2_taps,
                      ((0, 0), (0, cpad - cout), (0, cpad - cout))).astype(jnp.bfloat16)
    g = jnp.pad(gamma.astype(jnp.float32), (0, cpad - cout))
    b = jnp.pad(beta.astype(jnp.float32), (0, cpad - cout))

    # Skip path (bf16): x[:, ::s, ::s, :] zero-padded to Cout (and lane-padded to Cpad).
    if s > 1 or cin != cout:
        sk = x_nhwc[:, ::s, ::s, :]
    else:
        sk = x_nhwc
    skip = jnp.pad(sk, ((0, 0), (0, 0), (0, 0), (0, cpad - cin))).astype(jnp.bfloat16)

    m_total = float(n * ho * wo)
    cnt_tile = float(ho * wo)

    # ----- stage 1: conv1 (+ BN partials), then fold global BN1 into scale/shift -----
    conv1, stats1 = _conv1_stats(phases, w1_taps, ho, wo, cpad, s)
    scale1, shift1 = _bn_scale_shift(stats1, g, b, cnt_tile, m_total)

    # ----- stage 2: fused relu(BN1(conv1)) -> conv2 (+ BN partials); y1 stays in VMEM ----
    conv2, stats2 = _norm_relu_conv2_stats(conv1, scale1, shift1, w2_taps, ho, wo, cpad)
    scale2, shift2 = _bn_scale_shift(stats2, g, b, cnt_tile, m_total)

    # ----- stage 3: relu(BN2(conv2) + skip) -----
    out = _norm_skip_relu(conv2, scale2, shift2, skip, ho, wo, cpad)

    out = out[:, :, :, :cout]
    return jnp.transpose(out, (0, 3, 1, 2))   # back to NCHW


# ---------------------------------------------------------------------------
# Pure-JAX reference matching the PyTorch forward (training-mode BN)
# ---------------------------------------------------------------------------
def _reference(x, w1, w2, gamma, beta, stride):
    def conv(z, wt, st):
        return jax.lax.conv_general_dilated(
            z, wt, window_strides=(st, st), padding=((1, 1), (1, 1)),
            dimension_numbers=("NCHW", "OIHW", "NCHW"))

    def bn(z):
        mean = jnp.mean(z, axis=(0, 2, 3), keepdims=True)
        var = jnp.mean((z - mean) ** 2, axis=(0, 2, 3), keepdims=True)
        return (gamma[None, :, None, None] * (z - mean) * jax.lax.rsqrt(var + BN_EPS)
                + beta[None, :, None, None])

    cin, cout = x.shape[1], w1.shape[0]
    r = jax.nn.relu(bn(conv(x, w1, stride)))
    r = bn(conv(r, w2, 1))
    if stride > 1 or cin != cout:
        skip = x[:, :, ::stride, ::stride]
        skip = jnp.pad(skip, ((0, 0), (0, cout - cin), (0, 0), (0, 0)))
    else:
        skip = x
    return jax.nn.relu(r + skip)


def _run_case(key, n, cin, cout, h, w, stride):
    k1, k2, k3, k4, k5 = jax.random.split(key, 5)
    x = jax.random.normal(k1, (n, cin, h, w), jnp.float32)
    w1 = jax.random.normal(k2, (cout, cin, 3, 3), jnp.float32) / np.sqrt(cin * 9)
    w2 = jax.random.normal(k3, (cout, cout, 3, 3), jnp.float32) / np.sqrt(cout * 9)
    gamma = 1.0 + 0.1 * jax.random.normal(k4, (cout,), jnp.float32)
    beta = 0.1 * jax.random.normal(k5, (cout,), jnp.float32)

    fwd = jax.jit(functools.partial(residual_block_forward, stride=stride))
    out = jax.block_until_ready(fwd(x, w1, w2, gamma, beta))
    ref = jax.block_until_ready(_reference(x, w1, w2, gamma, beta, stride))

    ho = (h - 1) // stride + 1
    wo = (w - 1) // stride + 1
    assert out.shape == (n, cout, ho, wo), out.shape
    # bf16 MXU operands + bf16 intermediates/skip vs. an all-f32 reference -> loose tol.
    np.testing.assert_allclose(np.asarray(out), np.asarray(ref), rtol=3e-2, atol=3e-2)


if __name__ == "__main__":
    key = jax.random.PRNGKey(0)
    k_a, k_b = jax.random.split(key)
    # Down-sampling block (stride 2, channel expansion -> padded skip).
    _run_case(k_a, n=2, cin=4, cout=8, h=16, w=16, stride=2)
    # Identity-skip block (stride 1, cin == cout).
    _run_case(k_b, n=2, cin=8, cout=8, h=8, w=8, stride=1)
    print("KERNEL_OK")
</pallas_src>

<mosaic_0001>
module attributes {stable_mosaic.version = 11 : i64} {
  func.func @_conv1_stats_kernel(%arg0: i32, %arg1: memref<1x4x9x9x4xf32, #tpu.memory_space<vmem>>, %arg2: memref<9x4x128xbf16, #tpu.memory_space<vmem>>, %arg3: memref<1x8x8x128xbf16, #tpu.memory_space<vmem>>, %arg4: memref<1x2x128xf32, #tpu.memory_space<vmem>>) attributes {dimension_semantics = [#tpu.dimension_semantics<parallel>], iteration_bounds = array<i64: 2>, scalar_prefetch = 0 : i64, scratch_operands = 0 : i64, tpu.core_type = #tpu.core_type<tc>, window_params = [{transform_indices = @transform_0, window_bounds = array<i64: 1, 4, 9, 9, 4>}, {pipeline_mode = #tpu.pipeline_mode<synchronous>, transform_indices = @transform_1, window_bounds = array<i64: 9, 4, 128>}, {transform_indices = @transform_2, window_bounds = array<i64: 1, 8, 8, 128>}, {transform_indices = @transform_3, window_bounds = array<i64: 1, 2, 128>}]} {
    %cst = arith.constant 0.000000e+00 : f32
    %0 = vector.broadcast %cst : f32 to vector<64x128xf32>
    %c0 = arith.constant 0 : index
    %c0_0 = arith.constant 0 : index
    %c0_1 = arith.constant 0 : index
    %c0_2 = arith.constant 0 : index
    %c0_3 = arith.constant 0 : index
    %1 = vector.load %arg1[%c0, %c0_0, %c0_1, %c0_2, %c0_3] : memref<1x4x9x9x4xf32, #tpu.memory_space<vmem>>, vector<1x1x8x8x4xf32>
    %2 = vector.shape_cast %1 : vector<1x1x8x8x4xf32> to vector<8x8x4xf32>
    %3 = vector.shape_cast %2 : vector<8x8x4xf32> to vector<64x4xf32>
    %4 = arith.truncf %3 : vector<64x4xf32> to vector<64x4xbf16>
    %c0_4 = arith.constant 0 : index
    %c0_5 = arith.constant 0 : index
    %c0_6 = arith.constant 0 : index
    %5 = vector.load %arg2[%c0_4, %c0_5, %c0_6] : memref<9x4x128xbf16, #tpu.memory_space<vmem>>, vector<1x4x128xbf16>
    %6 = vector.shape_cast %5 : vector<1x4x128xbf16> to vector<4x128xbf16>
    %cst_7 = arith.constant dense<0.000000e+00> : vector<64x128xf32>
    %7 = tpu.matmul %4, %6, %cst_7 {dimension_numbers = #tpu.dot_dimension_numbers<[1], [0], [0], [1], [0, 0, 1, 1], [], []>} : vector<64x4xbf16>, vector<4x128xbf16>, vector<64x128xf32> -> vector<64x128xf32>
    %8 = arith.addf %0, %7 : vector<64x128xf32>
    %c0_8 = arith.constant 0 : index
    %c1 = arith.constant 1 : index
    %c0_9 = arith.constant 0 : index
    %c0_10 = arith.constant 0 : index
    %c0_11 = arith.constant 0 : index
    %9 = vector.load %arg1[%c0_8, %c1, %c0_9, %c0_10, %c0_11] : memref<1x4x9x9x4xf32, #tpu.memory_space<vmem>>, vector<1x1x8x8x4xf32>
    %10 = vector.shape_cast %9 : vector<1x1x8x8x4xf32> to vector<8x8x4xf32>
    %11 = vector.shape_cast %10 : vector<8x8x4xf32> to vector<64x4xf32>
    %12 = arith.truncf %11 : vector<64x4xf32> to vector<64x4xbf16>
    %c1_12 = arith.constant 1 : index
    %c0_13 = arith.constant 0 : index
    %c0_14 = arith.constant 0 : index
    %13 = vector.load %arg2[%c1_12, %c0_13, %c0_14] : memref<9x4x128xbf16, #tpu.memory_space<vmem>>, vector<1x4x128xbf16>
    %14 = vector.shape_cast %13 : vector<1x4x128xbf16> to vector<4x128xbf16>
    %cst_15 = arith.constant dense<0.000000e+00> : vector<64x128xf32>
    %15 = tpu.matmul %12, %14, %cst_15 {dimension_numbers = #tpu.dot_dimension_numbers<[1], [0], [0], [1], [0, 0, 1, 1], [], []>} : vector<64x4xbf16>, vector<4x128xbf16>, vector<64x128xf32> -> vector<64x128xf32>
    %16 = arith.addf %8, %15 : vector<64x128xf32>
    %c0_16 = arith.constant 0 : index
    %c0_17 = arith.constant 0 : index
    %c0_18 = arith.constant 0 : index
    %c1_19 = arith.constant 1 : index
    %c0_20 = arith.constant 0 : index
    %17 = vector.load %arg1[%c0_16, %c0_17, %c0_18, %c1_19, %c0_20] : memref<1x4x9x9x4xf32, #tpu.memory_space<vmem>>, vector<1x1x8x8x4xf32>
    %18 = vector.shape_cast %17 : vector<1x1x8x8x4xf32> to vector<8x8x4xf32>
    %19 = vector.shape_cast %18 : vector<8x8x4xf32> to vector<64x4xf32>
    %20 = arith.truncf %19 : vector<64x4xf32> to vector<64x4xbf16>
    %c2 = arith.constant 2 : index
    %c0_21 = arith.constant 0 : index
    %c0_22 = arith.constant 0 : index
    %21 = vector.load %arg2[%c2, %c0_21, %c0_22] : memref<9x4x128xbf16, #tpu.memory_space<vmem>>, vector<1x4x128xbf16>
    %22 = vector.shape_cast %21 : vector<1x4x128xbf16> to vector<4x128xbf16>
    %cst_23 = arith.constant dense<0.000000e+00> : vector<64x128xf32>
    %23 = tpu.matmul %20, %22, %cst_23 {dimension_numbers = #tpu.dot_dimension_numbers<[1], [0], [0], [1], [0, 0, 1, 1], [], []>} : vector<64x4xbf16>, vector<4x128xbf16>, vector<64x128xf32> -> vector<64x128xf32>
    %24 = arith.addf %16, %23 : vector<64x128xf32>
    %c0_24 = arith.constant 0 : index
    %c2_25 = arith.constant 2 : index
    %c0_26 = arith.constant 0 : index
    %c0_27 = arith.constant 0 : index
    %c0_28 = arith.constant 0 : index
    %25 = vector.load %arg1[%c0_24, %c2_25, %c0_26, %c0_27, %c0_28] : memref<1x4x9x9x4xf32, #tpu.memory_space<vmem>>, vector<1x1x8x8x4xf32>
    %26 = vector.shape_cast %25 : vector<1x1x8x8x4xf32> to vector<8x8x4xf32>
    %27 = vector.shape_cast %26 : vector<8x8x4xf32> to vector<64x4xf32>
    %28 = arith.truncf %27 : vector<64x4xf32> to vector<64x4xbf16>
    %c3 = arith.constant 3 : index
    %c0_29 = arith.constant 0 : index
    %c0_30 = arith.constant 0 : index
    %29 = vector.load %arg2[%c3, %c0_29, %c0_30] : memref<9x4x128xbf16, #tpu.memory_space<vmem>>, vector<1x4x128xbf16>
    %30 = vector.shape_cast %29 : vector<1x4x128xbf16> to vector<4x128xbf16>
    %cst_31 = arith.constant dense<0.000000e+00> : vector<64x128xf32>
    %31 = tpu.matmul %28, %30, %cst_31 {dimension_numbers = #tpu.dot_dimension_numbers<[1], [0], [0], [1], [0, 0, 1, 1], [], []>} : vector<64x4xbf16>, vector<4x128xbf16>, vector<64x128xf32> -> vector<64x128xf32>
    %32 = arith.addf %24, %31 : vector<64x128xf32>
    %c0_32 = arith.constant 0 : index
    %c3_33 = arith.constant 3 : index
    %c0_34 = arith.constant 0 : index
    %c0_35 = arith.constant 0 : index
    %c0_36 = arith.constant 0 : index
    %33 = vector.load %arg1[%c0_32, %c3_33, %c0_34, %c0_35, %c0_36] : memref<1x4x9x9x4xf32, #tpu.memory_space<vmem>>, vector<1x1x8x8x4xf32>
    %34 = vector.shape_cast %33 : vector<1x1x8x8x4xf32> to vector<8x8x4xf32>
    %35 = vector.shape_cast %34 : vector<8x8x4xf32> to vector<64x4xf32>
    %36 = arith.truncf %35 : vector<64x4xf32> to vector<64x4xbf16>
    %c4 = arith.constant 4 : index
    %c0_37 = arith.constant 0 : index
    %c0_38 = arith.constant 0 : index
    %37 = vector.load %arg2[%c4, %c0_37, %c0_38] : memref<9x4x128xbf16, #tpu.memory_space<vmem>>, vector<1x4x128xbf16>
    %38 = vector.shape_cast %37 : vector<1x4x128xbf16> to vector<4x128xbf16>
    %cst_39 = arith.constant dense<0.000000e+00> : vector<64x128xf32>
    %39 = tpu.matmul %36, %38, %cst_39 {dimension_numbers = #tpu.dot_dimension_numbers<[1], [0], [0], [1], [0, 0, 1, 1], [], []>} : vector<64x4xbf16>, vector<4x128xbf16>, vector<64x128xf32> -> vector<64x128xf32>
    %40 = arith.addf %32, %39 : vector<64x128xf32>
    %c0_40 = arith.constant 0 : index
    %c2_41 = arith.constant 2 : index
    %c0_42 = arith.constant 0 : index
    %c1_43 = arith.constant 1 : index
    %c0_44 = arith.constant 0 : index
    %41 = vector.load %arg1[%c0_40, %c2_41, %c0_42, %c1_43, %c0_44] : memref<1x4x9x9x4xf32, #tpu.memory_space<vmem>>, vector<1x1x8x8x4xf32>
    %42 = vector.shape_cast %41 : vector<1x1x8x8x4xf32> to vector<8x8x4xf32>
    %43 = vector.shape_cast %42 : vector<8x8x4xf32> to vector<64x4xf32>
    %44 = arith.truncf %43 : vector<64x4xf32> to vector<64x4xbf16>
    %c5 = arith.constant 5 : index
    %c0_45 = arith.constant 0 : index
    %c0_46 = arith.constant 0 : index
    %45 = vector.load %arg2[%c5, %c0_45, %c0_46] : memref<9x4x128xbf16, #tpu.memory_space<vmem>>, vector<1x4x128xbf16>
    %46 = vector.shape_cast %45 : vector<1x4x128xbf16> to vector<4x128xbf16>
    %cst_47 = arith.constant dense<0.000000e+00> : vector<64x128xf32>
    %47 = tpu.matmul %44, %46, %cst_47 {dimension_numbers = #tpu.dot_dimension_numbers<[1], [0], [0], [1], [0, 0, 1, 1], [], []>} : vector<64x4xbf16>, vector<4x128xbf16>, vector<64x128xf32> -> vector<64x128xf32>
    %48 = arith.addf %40, %47 : vector<64x128xf32>
    %c0_48 = arith.constant 0 : index
    %c0_49 = arith.constant 0 : index
    %c1_50 = arith.constant 1 : index
    %c0_51 = arith.constant 0 : index
    %c0_52 = arith.constant 0 : index
    %49 = vector.load %arg1[%c0_48, %c0_49, %c1_50, %c0_51, %c0_52] : memref<1x4x9x9x4xf32, #tpu.memory_space<vmem>>, vector<1x1x8x8x4xf32>
    %50 = vector.shape_cast %49 : vector<1x1x8x8x4xf32> to vector<8x8x4xf32>
    %51 = vector.shape_cast %50 : vector<8x8x4xf32> to vector<64x4xf32>
    %52 = arith.truncf %51 : vector<64x4xf32> to vector<64x4xbf16>
    %c6 = arith.constant 6 : index
    %c0_53 = arith.constant 0 : index
    %c0_54 = arith.constant 0 : index
    %53 = vector.load %arg2[%c6, %c0_53, %c0_54] : memref<9x4x128xbf16, #tpu.memory_space<vmem>>, vector<1x4x128xbf16>
    %54 = vector.shape_cast %53 : vector<1x4x128xbf16> to vector<4x128xbf16>
    %cst_55 = arith.constant dense<0.000000e+00> : vector<64x128xf32>
    %55 = tpu.matmul %52, %54, %cst_55 {dimension_numbers = #tpu.dot_dimension_numbers<[1], [0], [0], [1], [0, 0, 1, 1], [], []>} : vector<64x4xbf16>, vector<4x128xbf16>, vector<64x128xf32> -> vector<64x128xf32>
    %56 = arith.addf %48, %55 : vector<64x128xf32>
    %c0_56 = arith.constant 0 : index
    %c1_57 = arith.constant 1 : index
    %c1_58 = arith.constant 1 : index
    %c0_59 = arith.constant 0 : index
    %c0_60 = arith.constant 0 : index
    %57 = vector.load %arg1[%c0_56, %c1_57, %c1_58, %c0_59, %c0_60] : memref<1x4x9x9x4xf32, #tpu.memory_space<vmem>>, vector<1x1x8x8x4xf32>
    %58 = vector.shape_cast %57 : vector<1x1x8x8x4xf32> to vector<8x8x4xf32>
    %59 = vector.shape_cast %58 : vector<8x8x4xf32> to vector<64x4xf32>
    %60 = arith.truncf %59 : vector<64x4xf32> to vector<64x4xbf16>
    %c7 = arith.constant 7 : index
    %c0_61 = arith.constant 0 : index
    %c0_62 = arith.constant 0 : index
    %61 = vector.load %arg2[%c7, %c0_61, %c0_62] : memref<9x4x128xbf16, #tpu.memory_space<vmem>>, vector<1x4x128xbf16>
    %62 = vector.shape_cast %61 : vector<1x4x128xbf16> to vector<4x128xbf16>
    %cst_63 = arith.constant dense<0.000000e+00> : vector<64x128xf32>
    %63 = tpu.matmul %60, %62, %cst_63 {dimension_numbers = #tpu.dot_dimension_numbers<[1], [0], [0], [1], [0, 0, 1, 1], [], []>} : vector<64x4xbf16>, vector<4x128xbf16>, vector<64x128xf32> -> vector<64x128xf32>
    %64 = arith.addf %56, %63 : vector<64x128xf32>
    %c0_64 = arith.constant 0 : index
    %c0_65 = arith.constant 0 : index
    %c1_66 = arith.constant 1 : index
    %c1_67 = arith.constant 1 : index
    %c0_68 = arith.constant 0 : index
    %65 = vector.load %arg1[%c0_64, %c0_65, %c1_66, %c1_67, %c0_68] : memref<1x4x9x9x4xf32, #tpu.memory_space<vmem>>, vector<1x1x8x8x4xf32>
    %66 = vector.shape_cast %65 : vector<1x1x8x8x4xf32> to vector<8x8x4xf32>
    %67 = vector.shape_cast %66 : vector<8x8x4xf32> to vector<64x4xf32>
    %68 = arith.truncf %67 : vector<64x4xf32> to vector<64x4xbf16>
    %c8 = arith.constant 8 : index
    %c0_69 = arith.constant 0 : index
    %c0_70 = arith.constant 0 : index
    %69 = vector.load %arg2[%c8, %c0_69, %c0_70] : memref<9x4x128xbf16, #tpu.memory_space<vmem>>, vector<1x4x128xbf16>
    %70 = vector.shape_cast %69 : vector<1x4x128xbf16> to vector<4x128xbf16>
    %cst_71 = arith.constant dense<0.000000e+00> : vector<64x128xf32>
    %71 = tpu.matmul %68, %70, %cst_71 {dimension_numbers = #tpu.dot_dimension_numbers<[1], [0], [0], [1], [0, 0, 1, 1], [], []>} : vector<64x4xbf16>, vector<4x128xbf16>, vector<64x128xf32> -> vector<64x128xf32>
    %72 = arith.addf %64, %71 : vector<64x128xf32>
    %73 = vector.shape_cast %72 : vector<64x128xf32> to vector<8x8x128xf32>
    %74 = arith.truncf %73 : vector<8x8x128xf32> to vector<8x8x128xbf16>
    %c0_72 = arith.constant 0 : index
    %c0_73 = arith.constant 0 : index
    %c0_74 = arith.constant 0 : index
    %c0_75 = arith.constant 0 : index
    %75 = vector.load %arg3[%c0_72, %c0_73, %c0_74, %c0_75] : memref<1x8x8x128xbf16, #tpu.memory_space<vmem>>, vector<1x8x8x128xbf16>
    %76 = vector.shape_cast %75 : vector<1x8x8x128xbf16> to vector<8x8x128xbf16>
    %77 = vector.shape_cast %74 : vector<8x8x128xbf16> to vector<1x8x8x128xbf16>
    tpu.vector_store %arg3[%c0_72, %c0_73, %c0_74, %c0_75], %77 {strides = array<i32>} : memref<1x8x8x128xbf16, #tpu.memory_space<vmem>>, vector<1x8x8x128xbf16>,
    %cst_76 = arith.constant dense<0.000000e+00> : vector<128xf32>
    %78 = vector.multi_reduction <add>, %72, %cst_76 [0] : vector<64x128xf32> to vector<128xf32>
    %79 = vector.shape_cast %78 : vector<128xf32> to vector<1x128xf32>
    %cst_77 = arith.constant 1.562500e-02 : f32
    %80 = vector.broadcast %cst_77 : f32 to vector<1x128xf32>
    %81 = arith.mulf %79, %80 : vector<1x128xf32>
    %82 = vector.broadcast %81 : vector<1x128xf32> to vector<64x128xf32>
    %83 = arith.subf %72, %82 : vector<64x128xf32>
    %c0_78 = arith.constant 0 : index
    %c0_79 = arith.constant 0 : index
    %c0_80 = arith.constant 0 : index
    %84 = vector.load %arg4[%c0_78, %c0_79, %c0_80] : memref<1x2x128xf32, #tpu.memory_space<vmem>>, vector<1x1x128xf32>
    %85 = vector.shape_cast %84 : vector<1x1x128xf32> to vector<1x128xf32>
    %86 = vector.shape_cast %79 : vector<1x128xf32> to vector<1x1x128xf32>
    tpu.vector_store %arg4[%c0_78, %c0_79, %c0_80], %86 {strides = array<i32>} : memref<1x2x128xf32, #tpu.memory_space<vmem>>, vector<1x1x128xf32>,
    %87 = arith.mulf %83, %83 : vector<64x128xf32>
    %cst_81 = arith.constant dense<0.000000e+00> : vector<128xf32>
    %88 = vector.multi_reduction <add>, %87, %cst_81 [0] : vector<64x128xf32> to vector<128xf32>
    %89 = vector.shape_cast %88 : vector<128xf32> to vector<1x128xf32>
    %c0_82 = arith.constant 0 : index
    %c1_83 = arith.constant 1 : index
    %c0_84 = arith.constant 0 : index
    %90 = vector.load %arg4[%c0_82, %c1_83, %c0_84] : memref<1x2x128xf32, #tpu.memory_space<vmem>>, vector<1x1x128xf32>
    %91 = vector.shape_cast %90 : vector<1x1x128xf32> to vector<1x128xf32>
    %92 = vector.shape_cast %89 : vector<1x128xf32> to vector<1x1x128xf32>
    tpu.vector_store %arg4[%c0_82, %c1_83, %c0_84], %92 {strides = array<i32>} : memref<1x2x128xf32, #tpu.memory_space<vmem>>, vector<1x1x128xf32>,
    return
  }
  func.func @transform_0(%arg0: i32) -> (i32, i32, i32, i32, i32) {
    %c0_i32 = arith.constant 0 : i32
    %c0_i32_0 = arith.constant 0 : i32
    %c0_i32_1 = arith.constant 0 : i32
    %c0_i32_2 = arith.constant 0 : i32
    %c0_i32_3 = arith.constant 0 : i32
    return %arg0, %c0_i32, %c0_i32_0, %c0_i32_1, %c0_i32_2 : i32, i32, i32, i32, i32
  }
  func.func @transform_1(%arg0: i32) -> (i32, i32, i32) {
    %c0_i32 = arith.constant 0 : i32
    %c0_i32_0 = arith.constant 0 : i32
    %c0_i32_1 = arith.constant 0 : i32
    %c0_i32_2 = arith.constant 0 : i32
    return %c0_i32, %c0_i32_0, %c0_i32_1 : i32, i32, i32
  }
  func.func @transform_2(%arg0: i32) -> (i32, i32, i32, i32) {
    %c0_i32 = arith.constant 0 : i32
    %c0_i32_0 = arith.constant 0 : i32
    %c0_i32_1 = arith.constant 0 : i32
    %c0_i32_2 = arith.constant 0 : i32
    return %arg0, %c0_i32, %c0_i32_0, %c0_i32_1 : i32, i32, i32, i32
  }
  func.func @transform_3(%arg0: i32) -> (i32, i32, i32) {
    %c0_i32 = arith.constant 0 : i32
    %c0_i32_0 = arith.constant 0 : i32
    %c0_i32_1 = arith.constant 0 : i32
    return %arg0, %c0_i32, %c0_i32_0 : i32, i32, i32
  }
}

module attributes {stable_mosaic.version = 11 : i64} {
  func.func @_norm_relu_conv2_stats_kernel(%arg0: i32, %arg1: memref<1x8x8x128xbf16, #tpu.memory_space<vmem>>, %arg2: memref<1x128xf32, #tpu.memory_space<vmem>>, %arg3: memref<1x128xf32, #tpu.memory_space<vmem>>, %arg4: memref<9x128x128xbf16, #tpu.memory_space<vmem>>, %arg5: memref<1x8x8x128xbf16, #tpu.memory_space<vmem>>, %arg6: memref<1x2x128xf32, #tpu.memory_space<vmem>>, %arg7: memref<10x10x128xf32, #tpu.memory_space<vmem>>) attributes {dimension_semantics = [#tpu.dimension_semantics<parallel>], iteration_bounds = array<i64: 2>, scalar_prefetch = 0 : i64, scratch_operands = 1 : i64, tpu.core_type = #tpu.core_type<tc>, window_params = [{transform_indices = @transform_0, window_bounds = array<i64: 1, 8, 8, 128>}, {pipeline_mode = #tpu.pipeline_mode<synchronous>, transform_indices = @transform_1, window_bounds = array<i64: 1, 128>}, {pipeline_mode = #tpu.pipeline_mode<synchronous>, transform_indices = @transform_2, window_bounds = array<i64: 1, 128>}, {pipeline_mode = #tpu.pipeline_mode<synchronous>, transform_indices = @transform_3, window_bounds = array<i64: 9, 128, 128>}, {transform_indices = @transform_4, window_bounds = array<i64: 1, 8, 8, 128>}, {transform_indices = @transform_5, window_bounds = array<i64: 1, 2, 128>}]} {
    %cst = arith.constant 0.000000e+00 : f32
    %0 = vector.broadcast %cst : f32 to vector<10x10x128xf32>
    %c0 = arith.constant 0 : index
    %c0_0 = arith.constant 0 : index
    %c0_1 = arith.constant 0 : index
    %1 = vector.load %arg7[%c0, %c0_0, %c0_1] : memref<10x10x128xf32, #tpu.memory_space<vmem>>, vector<10x10x128xf32>
    tpu.vector_store %arg7[%c0, %c0_0, %c0_1], %0 {strides = array<i32>} : memref<10x10x128xf32, #tpu.memory_space<vmem>>, vector<10x10x128xf32>,
    %c0_2 = arith.constant 0 : index
    %c0_3 = arith.constant 0 : index
    %c0_4 = arith.constant 0 : index
    %c0_5 = arith.constant 0 : index
    %2 = vector.load %arg1[%c0_2, %c0_3, %c0_4, %c0_5] : memref<1x8x8x128xbf16, #tpu.memory_space<vmem>>, vector<1x8x8x128xbf16>
    %3 = vector.shape_cast %2 : vector<1x8x8x128xbf16> to vector<8x8x128xbf16>
    %4 = arith.extf %3 : vector<8x8x128xbf16> to vector<8x8x128xf32>
    %c0_6 = arith.constant 0 : index
    %c0_7 = arith.constant 0 : index
    %5 = vector.load %arg2[%c0_6, %c0_7] : memref<1x128xf32, #tpu.memory_space<vmem>>, vector<1x128xf32>
    %6 = vector.shape_cast %5 : vector<1x128xf32> to vector<1x1x128xf32>
    %7 = vector.broadcast %6 : vector<1x1x128xf32> to vector<8x8x128xf32>
    %8 = arith.mulf %4, %7 : vector<8x8x128xf32>
    %c0_8 = arith.constant 0 : index
    %c0_9 = arith.constant 0 : index
    %9 = vector.load %arg3[%c0_8, %c0_9] : memref<1x128xf32, #tpu.memory_space<vmem>>, vector<1x128xf32>
    %10 = vector.shape_cast %9 : vector<1x128xf32> to vector<1x1x128xf32>
    %11 = vector.broadcast %10 : vector<1x1x128xf32> to vector<8x8x128xf32>
    %12 = arith.addf %8, %11 : vector<8x8x128xf32>
    %cst_10 = arith.constant 0.000000e+00 : f32
    %13 = vector.broadcast %cst_10 : f32 to vector<8x8x128xf32>
    %14 = arith.maximumf %12, %13 : vector<8x8x128xf32>
    %c1 = arith.constant 1 : index
    %c1_11 = arith.constant 1 : index
    %c0_12 = arith.constant 0 : index
    %15 = vector.load %arg7[%c1, %c1_11, %c0_12] : memref<10x10x128xf32, #tpu.memory_space<vmem>>, vector<8x8x128xf32>
    tpu.vector_store %arg7[%c1, %c1_11, %c0_12], %14 {strides = array<i32>} : memref<10x10x128xf32, #tpu.memory_space<vmem>>, vector<8x8x128xf32>,
    %cst_13 = arith.constant 0.000000e+00 : f32
    %16 = vector.broadcast %cst_13 : f32 to vector<64x128xf32>
    %c0_14 = arith.constant 0 : index
    %c0_15 = arith.constant 0 : index
    %c0_16 = arith.constant 0 : index
    %17 = vector.load %arg7[%c0_14, %c0_15, %c0_16] : memref<10x10x128xf32, #tpu.memory_space<vmem>>, vector<8x8x128xf32>
    %18 = vector.shape_cast %17 : vector<8x8x128xf32> to vector<64x128xf32>
    %19 = arith.truncf %18 : vector<64x128xf32> to vector<64x128xbf16>
    %c0_17 = arith.constant 0 : index
    %c0_18 = arith.constant 0 : index
    %c0_19 = arith.constant 0 : index
    %20 = vector.load %arg4[%c0_17, %c0_18, %c0_19] : memref<9x128x128xbf16, #tpu.memory_space<vmem>>, vector<1x128x128xbf16>
    %21 = vector.shape_cast %20 : vector<1x128x128xbf16> to vector<128x128xbf16>
    %cst_20 = arith.constant dense<0.000000e+00> : vector<64x128xf32>
    %22 = tpu.matmul %19, %21, %cst_20 {dimension_numbers = #tpu.dot_dimension_numbers<[1], [0], [0], [1], [0, 0, 1, 1], [], []>} : vector<64x128xbf16>, vector<128x128xbf16>, vector<64x128xf32> -> vector<64x128xf32>
    %23 = arith.addf %16, %22 : vector<64x128xf32>
    %c0_21 = arith.constant 0 : index
    %c1_22 = arith.constant 1 : index
    %c0_23 = arith.constant 0 : index
    %24 = vector.load %arg7[%c0_21, %c1_22, %c0_23] : memref<10x10x128xf32, #tpu.memory_space<vmem>>, vector<8x8x128xf32>
    %25 = vector.shape_cast %24 : vector<8x8x128xf32> to vector<64x128xf32>
    %26 = arith.truncf %25 : vector<64x128xf32> to vector<64x128xbf16>
    %c1_24 = arith.constant 1 : index
    %c0_25 = arith.constant 0 : index
    %c0_26 = arith.constant 0 : index
    %27 = vector.load %arg4[%c1_24, %c0_25, %c0_26] : memref<9x128x128xbf16, #tpu.memory_space<vmem>>, vector<1x128x128xbf16>
    %28 = vector.shape_cast %27 : vector<1x128x128xbf16> to vector<128x128xbf16>
    %cst_27 = arith.constant dense<0.000000e+00> : vector<64x128xf32>
    %29 = tpu.matmul %26, %28, %cst_27 {dimension_numbers = #tpu.dot_dimension_numbers<[1], [0], [0], [1], [0, 0, 1, 1], [], []>} : vector<64x128xbf16>, vector<128x128xbf16>, vector<64x128xf32> -> vector<64x128xf32>
    %30 = arith.addf %23, %29 : vector<64x128xf32>
    %c0_28 = arith.constant 0 : index
    %c2 = arith.constant 2 : index
    %c0_29 = arith.constant 0 : index
    %31 = vector.load %arg7[%c0_28, %c2, %c0_29] : memref<10x10x128xf32, #tpu.memory_space<vmem>>, vector<8x8x128xf32>
    %32 = vector.shape_cast %31 : vector<8x8x128xf32> to vector<64x128xf32>
    %33 = arith.truncf %32 : vector<64x128xf32> to vector<64x128xbf16>
    %c2_30 = arith.constant 2 : index
    %c0_31 = arith.constant 0 : index
    %c0_32 = arith.constant 0 : index
    %34 = vector.load %arg4[%c2_30, %c0_31, %c0_32] : memref<9x128x128xbf16, #tpu.memory_space<vmem>>, vector<1x128x128xbf16>
    %35 = vector.shape_cast %34 : vector<1x128x128xbf16> to vector<128x128xbf16>
    %cst_33 = arith.constant dense<0.000000e+00> : vector<64x128xf32>
    %36 = tpu.matmul %33, %35, %cst_33 {dimension_numbers = #tpu.dot_dimension_numbers<[1], [0], [0], [1], [0, 0, 1, 1], [], []>} : vector<64x128xbf16>, vector<128x128xbf16>, vector<64x128xf32> -> vector<64x128xf32>
    %37 = arith.addf %30, %36 : vector<64x128xf32>
    %c1_34 = arith.constant 1 : index
    %c0_35 = arith.constant 0 : index
    %c0_36 = arith.constant 0 : index
    %38 = vector.load %arg7[%c1_34, %c0_35, %c0_36] : memref<10x10x128xf32, #tpu.memory_space<vmem>>, vector<8x8x128xf32>
    %39 = vector.shape_cast %38 : vector<8x8x128xf32> to vector<64x128xf32>
    %40 = arith.truncf %39 : vector<64x128xf32> to vector<64x128xbf16>
    %c3 = arith.constant 3 : index
    %c0_37 = arith.constant 0 : index
    %c0_38 = arith.constant 0 : index
    %41 = vector.load %arg4[%c3, %c0_37, %c0_38] : memref<9x128x128xbf16, #tpu.memory_space<vmem>>, vector<1x128x128xbf16>
    %42 = vector.shape_cast %41 : vector<1x128x128xbf16> to vector<128x128xbf16>
    %cst_39 = arith.constant dense<0.000000e+00> : vector<64x128xf32>
    %43 = tpu.matmul %40, %42, %cst_39 {dimension_numbers = #tpu.dot_dimension_numbers<[1], [0], [0], [1], [0, 0, 1, 1], [], []>} : vector<64x128xbf16>, vector<128x128xbf16>, vector<64x128xf32> -> vector<64x128xf32>
    %44 = arith.addf %37, %43 : vector<64x128xf32>
    %c1_40 = arith.constant 1 : index
    %c1_41 = arith.constant 1 : index
    %c0_42 = arith.constant 0 : index
    %45 = vector.load %arg7[%c1_40, %c1_41, %c0_42] : memref<10x10x128xf32, #tpu.memory_space<vmem>>, vector<8x8x128xf32>
    %46 = vector.shape_cast %45 : vector<8x8x128xf32> to vector<64x128xf32>
    %47 = arith.truncf %46 : vector<64x128xf32> to vector<64x128xbf16>
    %c4 = arith.constant 4 : index
    %c0_43 = arith.constant 0 : index
    %c0_44 = arith.constant 0 : index
    %48 = vector.load %arg4[%c4, %c0_43, %c0_44] : memref<9x128x128xbf16, #tpu.memory_space<vmem>>, vector<1x128x128xbf16>
    %49 = vector.shape_cast %48 : vector<1x128x128xbf16> to vector<128x128xbf16>
    %cst_45 = arith.constant dense<0.000000e+00> : vector<64x128xf32>
    %50 = tpu.matmul %47, %49, %cst_45 {dimension_numbers = #tpu.dot_dimension_numbers<[1], [0], [0], [1], [0, 0, 1, 1], [], []>} : vector<64x128xbf16>, vector<128x128xbf16>, vector<64x128xf32> -> vector<64x128xf32>
    %51 = arith.addf %44, %50 : vector<64x128xf32>
    %c1_46 = arith.constant 1 : index
    %c2_47 = arith.constant 2 : index
    %c0_48 = arith.constant 0 : index
    %52 = vector.load %arg7[%c1_46, %c2_47, %c0_48] : memref<10x10x128xf32, #tpu.memory_space<vmem>>, vector<8x8x128xf32>
    %53 = vector.shape_cast %52 : vector<8x8x128xf32> to vector<64x128xf32>
    %54 = arith.truncf %53 : vector<64x128xf32> to vector<64x128xbf16>
    %c5 = arith.constant 5 : index
    %c0_49 = arith.constant 0 : index
    %c0_50 = arith.constant 0 : index
    %55 = vector.load %arg4[%c5, %c0_49, %c0_50] : memref<9x128x128xbf16, #tpu.memory_space<vmem>>, vector<1x128x128xbf16>
    %56 = vector.shape_cast %55 : vector<1x128x128xbf16> to vector<128x128xbf16>
    %cst_51 = arith.constant dense<0.000000e+00> : vector<64x128xf32>
    %57 = tpu.matmul %54, %56, %cst_51 {dimension_numbers = #tpu.dot_dimension_numbers<[1], [0], [0], [1], [0, 0, 1, 1], [], []>} : vector<64x128xbf16>, vector<128x128xbf16>, vector<64x128xf32> -> vector<64x128xf32>
    %58 = arith.addf %51, %57 : vector<64x128xf32>
    %c2_52 = arith.constant 2 : index
    %c0_53 = arith.constant 0 : index
    %c0_54 = arith.constant 0 : index
    %59 = vector.load %arg7[%c2_52, %c0_53, %c0_54] : memref<10x10x128xf32, #tpu.memory_space<vmem>>, vector<8x8x128xf32>
    %60 = vector.shape_cast %59 : vector<8x8x128xf32> to vector<64x128xf32>
    %61 = arith.truncf %60 : vector<64x128xf32> to vector<64x128xbf16>
    %c6 = arith.constant 6 : index
    %c0_55 = arith.constant 0 : index
    %c0_56 = arith.constant 0 : index
    %62 = vector.load %arg4[%c6, %c0_55, %c0_56] : memref<9x128x128xbf16, #tpu.memory_space<vmem>>, vector<1x128x128xbf16>
    %63 = vector.shape_cast %62 : vector<1x128x128xbf16> to vector<128x128xbf16>
    %cst_57 = arith.constant dense<0.000000e+00> : vector<64x128xf32>
    %64 = tpu.matmul %61, %63, %cst_57 {dimension_numbers = #tpu.dot_dimension_numbers<[1], [0], [0], [1], [0, 0, 1, 1], [], []>} : vector<64x128xbf16>, vector<128x128xbf16>, vector<64x128xf32> -> vector<64x128xf32>
    %65 = arith.addf %58, %64 : vector<64x128xf32>
    %c2_58 = arith.constant 2 : index
    %c1_59 = arith.constant 1 : index
    %c0_60 = arith.constant 0 : index
    %66 = vector.load %arg7[%c2_58, %c1_59, %c0_60] : memref<10x10x128xf32, #tpu.memory_space<vmem>>, vector<8x8x128xf32>
    %67 = vector.shape_cast %66 : vector<8x8x128xf32> to vector<64x128xf32>
    %68 = arith.truncf %67 : vector<64x128xf32> to vector<64x128xbf16>
    %c7 = arith.constant 7 : index
    %c0_61 = arith.constant 0 : index
    %c0_62 = arith.constant 0 : index
    %69 = vector.load %arg4[%c7, %c0_61, %c0_62] : memref<9x128x128xbf16, #tpu.memory_space<vmem>>, vector<1x128x128xbf16>
    %70 = vector.shape_cast %69 : vector<1x128x128xbf16> to vector<128x128xbf16>
    %cst_63 = arith.constant dense<0.000000e+00> : vector<64x128xf32>
    %71 = tpu.matmul %68, %70, %cst_63 {dimension_numbers = #tpu.dot_dimension_numbers<[1], [0], [0], [1], [0, 0, 1, 1], [], []>} : vector<64x128xbf16>, vector<128x128xbf16>, vector<64x128xf32> -> vector<64x128xf32>
    %72 = arith.addf %65, %71 : vector<64x128xf32>
    %c2_64 = arith.constant 2 : index
    %c2_65 = arith.constant 2 : index
    %c0_66 = arith.constant 0 : index
    %73 = vector.load %arg7[%c2_64, %c2_65, %c0_66] : memref<10x10x128xf32, #tpu.memory_space<vmem>>, vector<8x8x128xf32>
    %74 = vector.shape_cast %73 : vector<8x8x128xf32> to vector<64x128xf32>
    %75 = arith.truncf %74 : vector<64x128xf32> to vector<64x128xbf16>
    %c8 = arith.constant 8 : index
    %c0_67 = arith.constant 0 : index
    %c0_68 = arith.constant 0 : index
    %76 = vector.load %arg4[%c8, %c0_67, %c0_68] : memref<9x128x128xbf16, #tpu.memory_space<vmem>>, vector<1x128x128xbf16>
    %77 = vector.shape_cast %76 : vector<1x128x128xbf16> to vector<128x128xbf16>
    %cst_69 = arith.constant dense<0.000000e+00> : vector<64x128xf32>
    %78 = tpu.matmul %75, %77, %cst_69 {dimension_numbers = #tpu.dot_dimension_numbers<[1], [0], [0], [1], [0, 0, 1, 1], [], []>} : vector<64x128xbf16>, vector<128x128xbf16>, vector<64x128xf32> -> vector<64x128xf32>
    %79 = arith.addf %72, %78 : vector<64x128xf32>
    %80 = vector.shape_cast %79 : vector<64x128xf32> to vector<8x8x128xf32>
    %81 = arith.truncf %80 : vector<8x8x128xf32> to vector<8x8x128xbf16>
    %c0_70 = arith.constant 0 : index
    %c0_71 = arith.constant 0 : index
    %c0_72 = arith.constant 0 : index
    %c0_73 = arith.constant 0 : index
    %82 = vector.load %arg5[%c0_70, %c0_71, %c0_72, %c0_73] : memref<1x8x8x128xbf16, #tpu.memory_space<vmem>>, vector<1x8x8x128xbf16>
    %83 = vector.shape_cast %82 : vector<1x8x8x128xbf16> to vector<8x8x128xbf16>
    %84 = vector.shape_cast %81 : vector<8x8x128xbf16> to vector<1x8x8x128xbf16>
    tpu.vector_store %arg5[%c0_70, %c0_71, %c0_72, %c0_73], %84 {strides = array<i32>} : memref<1x8x8x128xbf16, #tpu.memory_space<vmem>>, vector<1x8x8x128xbf16>,
    %cst_74 = arith.constant dense<0.000000e+00> : vector<128xf32>
    %85 = vector.multi_reduction <add>, %79, %cst_74 [0] : vector<64x128xf32> to vector<128xf32>
    %86 = vector.shape_cast %85 : vector<128xf32> to vector<1x128xf32>
    %cst_75 = arith.constant 1.562500e-02 : f32
    %87 = vector.broadcast %cst_75 : f32 to vector<1x128xf32>
    %88 = arith.mulf %86, %87 : vector<1x128xf32>
    %89 = vector.broadcast %88 : vector<1x128xf32> to vector<64x128xf32>
    %90 = arith.subf %79, %89 : vector<64x128xf32>
    %c0_76 = arith.constant 0 : index
    %c0_77 = arith.constant 0 : index
    %c0_78 = arith.constant 0 : index
    %91 = vector.load %arg6[%c0_76, %c0_77, %c0_78] : memref<1x2x128xf32, #tpu.memory_space<vmem>>, vector<1x1x128xf32>
    %92 = vector.shape_cast %91 : vector<1x1x128xf32> to vector<1x128xf32>
    %93 = vector.shape_cast %86 : vector<1x128xf32> to vector<1x1x128xf32>
    tpu.vector_store %arg6[%c0_76, %c0_77, %c0_78], %93 {strides = array<i32>} : memref<1x2x128xf32, #tpu.memory_space<vmem>>, vector<1x1x128xf32>,
    %94 = arith.mulf %90, %90 : vector<64x128xf32>
    %cst_79 = arith.constant dense<0.000000e+00> : vector<128xf32>
    %95 = vector.multi_reduction <add>, %94, %cst_79 [0] : vector<64x128xf32> to vector<128xf32>
    %96 = vector.shape_cast %95 : vector<128xf32> to vector<1x128xf32>
    %c0_80 = arith.constant 0 : index
    %c1_81 = arith.constant 1 : index
    %c0_82 = arith.constant 0 : index
    %97 = vector.load %arg6[%c0_80, %c1_81, %c0_82] : memref<1x2x128xf32, #tpu.memory_space<vmem>>, vector<1x1x128xf32>
    %98 = vector.shape_cast %97 : vector<1x1x128xf32> to vector<1x128xf32>
    %99 = vector.shape_cast %96 : vector<1x128xf32> to vector<1x1x128xf32>
    tpu.vector_store %arg6[%c0_80, %c1_81, %c0_82], %99 {strides = array<i32>} : memref<1x2x128xf32, #tpu.memory_space<vmem>>, vector<1x1x128xf32>,
    return
  }
  func.func @transform_0(%arg0: i32) -> (i32, i32, i32, i32) {
    %c0_i32 = arith.constant 0 : i32
    %c0_i32_0 = arith.constant 0 : i32
    %c0_i32_1 = arith.constant 0 : i32
    %c0_i32_2 = arith.constant 0 : i32
    return %arg0, %c0_i32, %c0_i32_0, %c0_i32_1 : i32, i32, i32, i32
  }
  func.func @transform_1(%arg0: i32) -> (i32, i32) {
    %c0_i32 = arith.constant 0 : i32
    %c0_i32_0 = arith.constant 0 : i32
    %c0_i32_1 = arith.constant 0 : i32
    return %c0_i32, %c0_i32_0 : i32, i32
  }
  func.func @transform_2(%arg0: i32) -> (i32, i32) {
    %c0_i32 = arith.constant 0 : i32
    %c0_i32_0 = arith.constant 0 : i32
    %c0_i32_1 = arith.constant 0 : i32
    return %c0_i32, %c0_i32_0 : i32, i32
  }
  func.func @transform_3(%arg0: i32) -> (i32, i32, i32) {
    %c0_i32 = arith.constant 0 : i32
    %c0_i32_0 = arith.constant 0 : i32
    %c0_i32_1 = arith.constant 0 : i32
    %c0_i32_2 = arith.constant 0 : i32
    return %c0_i32, %c0_i32_0, %c0_i32_1 : i32, i32, i32
  }
  func.func @transform_4(%arg0: i32) -> (i32, i32, i32, i32) {
    %c0_i32 = arith.constant 0 : i32
    %c0_i32_0 = arith.constant 0 : i32
    %c0_i32_1 = arith.constant 0 : i32
    %c0_i32_2 = arith.constant 0 : i32
    return %arg0, %c0_i32, %c0_i32_0, %c0_i32_1 : i32, i32, i32, i32
  }
  func.func @transform_5(%arg0: i32) -> (i32, i32, i32) {
    %c0_i32 = arith.constant 0 : i32
    %c0_i32_0 = arith.constant 0 : i32
    %c0_i32_1 = arith.constant 0 : i32
    return %arg0, %c0_i32, %c0_i32_0 : i32, i32, i32
  }
}

module attributes {stable_mosaic.version = 11 : i64} {
  func.func @_norm_skip_relu_kernel(%arg0: i32, %arg1: memref<1x8x8x128xbf16, #tpu.memory_space<vmem>>, %arg2: memref<1x128xf32, #tpu.memory_space<vmem>>, %arg3: memref<1x128xf32, #tpu.memory_space<vmem>>, %arg4: memref<1x8x8x128xbf16, #tpu.memory_space<vmem>>, %arg5: memref<1x8x8x128xf32, #tpu.memory_space<vmem>>) attributes {dimension_semantics = [#tpu.dimension_semantics<parallel>], iteration_bounds = array<i64: 2>, scalar_prefetch = 0 : i64, scratch_operands = 0 : i64, tpu.core_type = #tpu.core_type<tc>, window_params = [{transform_indices = @transform_0, window_bounds = array<i64: 1, 8, 8, 128>}, {pipeline_mode = #tpu.pipeline_mode<synchronous>, transform_indices = @transform_1, window_bounds = array<i64: 1, 128>}, {pipeline_mode = #tpu.pipeline_mode<synchronous>, transform_indices = @transform_2, window_bounds = array<i64: 1, 128>}, {transform_indices = @transform_3, window_bounds = array<i64: 1, 8, 8, 128>}, {transform_indices = @transform_4, window_bounds = array<i64: 1, 8, 8, 128>}]} {
    %c0 = arith.constant 0 : index
    %c0_0 = arith.constant 0 : index
    %c0_1 = arith.constant 0 : index
    %c0_2 = arith.constant 0 : index
    %0 = vector.load %arg1[%c0, %c0_0, %c0_1, %c0_2] : memref<1x8x8x128xbf16, #tpu.memory_space<vmem>>, vector<1x8x8x128xbf16>
    %1 = vector.shape_cast %0 : vector<1x8x8x128xbf16> to vector<8x8x128xbf16>
    %2 = arith.extf %1 : vector<8x8x128xbf16> to vector<8x8x128xf32>
    %c0_3 = arith.constant 0 : index
    %c0_4 = arith.constant 0 : index
    %3 = vector.load %arg2[%c0_3, %c0_4] : memref<1x128xf32, #tpu.memory_space<vmem>>, vector<1x128xf32>
    %4 = vector.shape_cast %3 : vector<1x128xf32> to vector<1x1x128xf32>
    %5 = vector.broadcast %4 : vector<1x1x128xf32> to vector<8x8x128xf32>
    %6 = arith.mulf %2, %5 : vector<8x8x128xf32>
    %c0_5 = arith.constant 0 : index
    %c0_6 = arith.constant 0 : index
    %7 = vector.load %arg3[%c0_5, %c0_6] : memref<1x128xf32, #tpu.memory_space<vmem>>, vector<1x128xf32>
    %8 = vector.shape_cast %7 : vector<1x128xf32> to vector<1x1x128xf32>
    %9 = vector.broadcast %8 : vector<1x1x128xf32> to vector<8x8x128xf32>
    %10 = arith.addf %6, %9 : vector<8x8x128xf32>
    %c0_7 = arith.constant 0 : index
    %c0_8 = arith.constant 0 : index
    %c0_9 = arith.constant 0 : index
    %c0_10 = arith.constant 0 : index
    %11 = vector.load %arg4[%c0_7, %c0_8, %c0_9, %c0_10] : memref<1x8x8x128xbf16, #tpu.memory_space<vmem>>, vector<1x8x8x128xbf16>
    %12 = vector.shape_cast %11 : vector<1x8x8x128xbf16> to vector<8x8x128xbf16>
    %13 = arith.extf %12 : vector<8x8x128xbf16> to vector<8x8x128xf32>
    %14 = arith.addf %10, %13 : vector<8x8x128xf32>
    %cst = arith.constant 0.000000e+00 : f32
    %15 = vector.broadcast %cst : f32 to vector<8x8x128xf32>
    %16 = arith.maximumf %14, %15 : vector<8x8x128xf32>
    %c0_11 = arith.constant 0 : index
    %c0_12 = arith.constant 0 : index
    %c0_13 = arith.constant 0 : index
    %c0_14 = arith.constant 0 : index
    %17 = vector.load %arg5[%c0_11, %c0_12, %c0_13, %c0_14] : memref<1x8x8x128xf32, #tpu.memory_space<vmem>>, vector<1x8x8x128xf32>
    %18 = vector.shape_cast %17 : vector<1x8x8x128xf32> to vector<8x8x128xf32>
    %19 = vector.shape_cast %16 : vector<8x8x128xf32> to vector<1x8x8x128xf32>
    tpu.vector_store %arg5[%c0_11, %c0_12, %c0_13, %c0_14], %19 {strides = array<i32>} : memref<1x8x8x128xf32, #tpu.memory_space<vmem>>, vector<1x8x8x128xf32>,
    return
  }
  func.func @transform_0(%arg0: i32) -> (i32, i32, i32, i32) {
    %c0_i32 = arith.constant 0 : i32
    %c0_i32_0 = arith.constant 0 : i32
    %c0_i32_1 = arith.constant 0 : i32
    %c0_i32_2 = arith.constant 0 : i32
    return %arg0, %c0_i32, %c0_i32_0, %c0_i32_1 : i32, i32, i32, i32
  }
  func.func @transform_1(%arg0: i32) -> (i32, i32) {
    %c0_i32 = arith.constant 0 : i32
    %c0_i32_0 = arith.constant 0 : i32
    %c0_i32_1 = arith.constant 0 : i32
    return %c0_i32, %c0_i32_0 : i32, i32
  }
  func.func @transform_2(%arg0: i32) -> (i32, i32) {
    %c0_i32 = arith.constant 0 : i32
    %c0_i32_0 = arith.constant 0 : i32
    %c0_i32_1 = arith.constant 0 : i32
    return %c0_i32, %c0_i32_0 : i32, i32
  }
  func.func @transform_3(%arg0: i32) -> (i32, i32, i32, i32) {
    %c0_i32 = arith.constant 0 : i32
    %c0_i32_0 = arith.constant 0 : i32
    %c0_i32_1 = arith.constant 0 : i32
    %c0_i32_2 = arith.constant 0 : i32
    return %arg0, %c0_i32, %c0_i32_0, %c0_i32_1 : i32, i32, i32, i32
  }
  func.func @transform_4(%arg0: i32) -> (i32, i32, i32, i32) {
    %c0_i32 = arith.constant 0 : i32
    %c0_i32_0 = arith.constant 0 : i32
    %c0_i32_1 = arith.constant 0 : i32
    %c0_i32_2 = arith.constant 0 : i32
    return %arg0, %c0_i32, %c0_i32_0, %c0_i32_1 : i32, i32, i32, i32
  }
}

</mosaic_0001>

<bundles_post_ra>
// kernel: residual_block_forward.5
= control target key start
LH: loop header
LB: loop body
LE: loop exit
PB: predicated region body
PF: predicated region fallthrough
CT: control target
= control target key end

     0   :  { %s468_s15 = smov 0   ;;  %s498_s0 = inlined_call_operand.vmem [shape: bf16[2,8,8,128], index: 0, kind: input, shape index: {}]   ;;  %s499_s1 = inlined_call_operand.vmem [shape: f32[1,128], index: 1, kind: input, shape index: {}]   ;;  %s500_s2 = inlined_call_operand.vmem [shape: f32[1,128], index: 2, kind: input, shape index: {}]   ;;  %s501_s3 = inlined_call_operand.vmem [shape: bf16[2,8,8,128], index: 3, kind: input, shape index: {}]   ;;  %s502_s4 = inlined_call_operand.vmem [shape: f32[2,8,8,128], index: 4, kind: output, shape index: {}]  }
   0x1 LB: > { %s371_s16 = sadd.s32 4294967295, %s441_s15   ;;  %p375_p0 = scmp.ge.s32.totalorder %s441_s15, 1  ;;  %s441_s15 = sphi %s468_s15, %s14_s15  }
   0x2   : > { %p172_p1 = scmp.lt.s32.totalorder %s441_s15, 3 }
   0x4   : > { %p173_p2 = pnand %p375_p0, %p172_p1 }
   0x5   : > { %p203_p3 = scmp.lt.s32.totalorder (!%p173_p2), %s371_s16, 1  ;;  %v382_v0 = vld [vmem:[%s499_s1] ss:$0 sm:$0xff] (!%p173_p2) }
   0x6   : > { %176 = sbr.rel (%p173_p2) target bundleno = 35 (0x23), region = 36  ;;  %v383_v11 = vld [vmem:[%s500_s2] ss:$0 sm:$0xff] (!%p173_p2) }
   0xd   : > { %s504_s16 = smov (!%p203_p3, %s371_s16), 1 }
   0xe   : > { %s386_s17 = sshll.u32 %s504_s16, 5  ;;  %s388_s28 = sshll.u32 %s504_s16, 6 }
   0xf   : > { %s207_s20 = scalar_lea.vmem %s498_s0, %s386_s17  ;;  %s212_s23 = scalar_lea.vmem %s501_s3, %s386_s17 }
  0x10   : > { %v390_v1 = vld [vmem:[%s207_s20] sm:$0xff]   ;;  %v421_v3 = vld [vmem:[%s207_s20 + $0x8] sm:$0xff]   ;;  %v422_v9 = vld [vmem:[%s207_s20 + $0x10] sm:$0xff]   ;;  %s217_s5 = scalar_lea.vmem %s502_s4, %s388_s28 }
  0x11   : > { %v406_v2 = vld [vmem:[%s212_s23] sm:$0xff]   ;;  %v391_v4 = vunpack.c.l.bf16 %v390_v1  ;;  %v392_v6 = vunpack.c.h.bf16 %v390_v1  ;;  %v424_v8 = vld [vmem:[%s212_s23 + $0x8] sm:$0xff]   ;;  %v425_v10 = vld [vmem:[%s212_s23 + $0x10] sm:$0xff]   ;;  %v395_v12 = vunpack.c.l.bf16 %v421_v3  ;;  %v396_v14 = vunpack.c.h.bf16 %v421_v3 }
  0x12   : > { %v407_v5 = vunpack.c.l.bf16 %v406_v2  ;;  %v408_v7 = vunpack.c.h.bf16 %v406_v2  ;;  %v411_v13 = vunpack.c.l.bf16 %v424_v8  ;;  %v412_v15 = vunpack.c.h.bf16 %v424_v8  ;;  %v423_v16 = vld [vmem:[%s207_s20 + $0x18] sm:$0xff]  }
  0x13   : > { %v241_v17 = vmul.f32 %v391_v4, %v382_v0  ;;  %v242_v18 = vmul.f32 %v392_v6, %v382_v0  ;;  %v399_v19 = vunpack.c.l.bf16 %v422_v9  ;;  %v415_v20 = vunpack.c.l.bf16 %v425_v10  ;;  %v426_v21 = vld [vmem:[%s212_s23 + $0x18] sm:$0xff]  }
  0x14   : > { %v243_v22 = vmul.f32 %v395_v12, %v382_v0  ;;  %v244_v23 = vmul.f32 %v396_v14, %v382_v0  ;;  %v400_v24 = vunpack.c.h.bf16 %v422_v9  ;;  %v416_v25 = vunpack.c.h.bf16 %v425_v10 }
  0x15   : > { %v256_v26 = vadd.f32 %v383_v11, %v241_v17  ;;  %v257_v27 = vadd.f32 %v383_v11, %v242_v18  ;;  %v245_v28 = vmul.f32 %v399_v19, %v382_v0  ;;  %v403_v29 = vunpack.c.l.bf16 %v423_v16 }
  0x16   : > { %v258_v30 = vadd.f32 %v383_v11, %v243_v22  ;;  %v259_v31 = vadd.f32 %v383_v11, %v244_v23  ;;  %v246_v32 = vmul.f32 %v400_v24, %v382_v0  ;;  %v419_v33 = vunpack.c.l.bf16 %v426_v21 }
  0x17   : > { %v280_v34 = vadd.f32 %v407_v5, %v256_v26  ;;  %v281_v35 = vadd.f32 %v408_v7, %v257_v27  ;;  %v260_v36 = vadd.f32 %v383_v11, %v245_v28  ;;  %v247_v37 = vmul.f32 %v403_v29, %v382_v0 }
  0x18   : > { %v282_v38 = vadd.f32 %v411_v13, %v258_v30  ;;  %v283_v39 = vadd.f32 %v412_v15, %v259_v31  ;;  %v261_v40 = vadd.f32 %v383_v11, %v246_v32  ;;  %v404_v41 = vunpack.c.h.bf16 %v423_v16 }
  0x19   : > { %v288_v42 = vmax.f32 %v280_v34, 0.0  ;;  %v289_v43 = vmax.f32 %v281_v35, 0.0  ;;  %v284_v44 = vadd.f32 %v415_v20, %v260_v36  ;;  %v262_v45 = vadd.f32 %v383_v11, %v247_v37 }
  0x1a   : > { %v290_v46 = vmax.f32 %v282_v38, 0.0  ;;  %v291_v47 = vmax.f32 %v283_v39, 0.0  ;;  %v285_v48 = vadd.f32 %v416_v25, %v261_v40  ;;  %v248_v49 = vmul.f32 %v404_v41, %v382_v0 }
  0x1b   : > { %296 = vst [vmem:[%s217_s5] sm:$0xff] %v288_v42  ;;  %297 = vst [vmem:[%s217_s5 + $0x8] sm:$0xff] %v289_v43  ;;  %v292_v50 = vmax.f32 %v284_v44, 0.0  ;;  %v286_v51 = vadd.f32 %v419_v33, %v262_v45  ;;  %v420_v52 = vunpack.c.h.bf16 %v426_v21 }
  0x1c   : > { %298 = vst [vmem:[%s217_s5 + $0x10] sm:$0xff] %v290_v46  ;;  %299 = vst [vmem:[%s217_s5 + $0x18] sm:$0xff] %v291_v47  ;;  %v293_v53 = vmax.f32 %v285_v48, 0.0  ;;  %v263_v54 = vadd.f32 %v383_v11, %v248_v49 }
  0x1d   : > { %300 = vst [vmem:[%s217_s5 + $0x20] sm:$0xff] %v292_v50  ;;  %v294_v55 = vmax.f32 %v286_v51, 0.0 }
  0x1e   : > { %301 = vst [vmem:[%s217_s5 + $0x28] sm:$0xff] %v293_v53  ;;  %v287_v56 = vadd.f32 %v420_v52, %v263_v54 }
  0x1f   : > { %302 = vst [vmem:[%s217_s5 + $0x30] sm:$0xff] %v294_v55 }
  0x20   : > { %v295_v57 = vmax.f32 %v287_v56, 0.0 }
  0x22   : > { %303 = vst [vmem:[%s217_s5 + $0x38] sm:$0xff] %v295_v57 }
  0x23 PF: > { %s14_s15 = sadd.s32 1, %s441_s15  }
  0x24   : > { %p11_p4 = scmp.ge.s32.totalorder %s14_s15, 4  }
  0x26   :  { %13 = sbr.rel (!%p11_p4) target bundleno = 1 (0x1), region = 69 }

// kernel: residual_block_forward.3
= control target key start
LH: loop header
LB: loop body
LE: loop exit
PB: predicated region body
PF: predicated region fallthrough
CT: control target
= control target key end

     0   :  { %s1621_s12 = smov 0   ;;  %s1826_s0 = inlined_call_operand.vmem [shape: f32[2,4,9,9,4], index: 0, kind: input, shape index: {}]   ;;  %s1827_s1 = inlined_call_operand.vmem [shape: bf16[9,4,128], index: 1, kind: input, shape index: {}]   ;;  %s1828_s2 = inlined_call_operand.vmem [shape: bf16[2,8,8,128], index: 2, kind: output, shape index: {0}]   ;;  %s1829_s3 = inlined_call_operand.vmem [shape: f32[2,2,128], index: 3, kind: output, shape index: {1}]  }
   0x1 LB: > { %s1238_s13 = sadd.s32 4294967295, %s1599_s12   ;;  %p1242_p0 = scmp.ge.s32.totalorder %s1599_s12, 1  ;;  %s1599_s12 = sphi %s1621_s12, %s14_s12  }
   0x2   : > { %p140_p1 = scmp.lt.s32.totalorder %s1599_s12, 3 }
   0x4   : > { %p141_p2 = pnand %p1242_p0, %p140_p1 }
   0x5   : > { %v1255_v0 = vld [vmem:[%s1827_s1 + $0x2] sm:$0x3] (!%p141_p2)  ;;  %vm224_vm0 = vcmask (!%p141_p2), 1041408   ;;  %v1635_v1 = vld [vmem:[%s1827_s1 + $0x8] sm:$0x3] (!%p141_p2)  ;;  %p168_p3 = scmp.lt.s32.totalorder (!%p141_p2), %s1238_s13, 1 }
   0x6   : > { %144 = sbr.rel (%p141_p2) target bundleno = 359 (0x167), region = 28  ;;  %1574 = vmatprep.subr.msk.bf16.mxu1 (!%p141_p2), %vm224_vm0, %v1255_v0  ;;  %1578 = vmatprep.subr.msk.bf16.mxu0 (!%p141_p2), %vm224_vm0, %v1635_v1  ;;  %v226_v2 = vsel (!%p141_p2), %vm224_vm0, %v1255_v0, 0  ;;  %v1643_v3 = vsel (!%p141_p2), %vm224_vm0, %v1635_v1, 0  ;;  %v195_v4 = vld [vmem:[%s1827_s1] sm:$0x3] (!%p141_p2)  ;;  %vm211_vm1 = vcmask (!%p141_p2), 31744  }
   0x7   : > { %1419 = vmatpush3.bf16.msra.mxu1 (!%p141_p2), %v226_v2  ;;  %1459 = vmatpush3.bf16.msra.mxu0 (!%p141_p2), %v1643_v3  ;;  %v1303_v5 = vld [vmem:[%s1827_s1 + $0xa] sm:$0x3] (!%p141_p2)  ;;  %v306_v15 = vsel (!%p141_p2), %vm224_vm0, %v195_v4, 0  ;;  %v1316_v25 = vld [vmem:[%s1827_s1 + $0xc] sm:$0x3] (!%p141_p2) }
   0x8   : > { %1575 = vmatprep.subr.msk.bf16.mxu1 (!%p141_p2), %vm224_vm0, %v195_v4  ;;  %1580 = vmatprep.subr.msk.bf16.mxu0 (!%p141_p2), %vm224_vm0, %v1303_v5  ;;  %v708_v20 = vsel (!%p141_p2), %vm224_vm0, %v1303_v5, 0  ;;  %v1264_v29 = vld [vmem:[%s1827_s1 + $0x4] sm:$0x3] (!%p141_p2)  ;;  %v811_v44 = vsel (!%p141_p2), %vm224_vm0, %v1316_v25, 0  ;;  %v1329_v46 = vld [vmem:[%s1827_s1 + $0xe] sm:$0x3] (!%p141_p2) }
   0x9   : > { %v400_v48 = vsel (!%p141_p2), %vm224_vm0, %v1264_v29, 0  ;;  %v1277_v51 = vld [vmem:[%s1827_s1 + $0x6] sm:$0x3] (!%p141_p2)  ;;  %v914_v4 = vsel (!%p141_p2), %vm224_vm0, %v1329_v46, 0 }
   0xd   : > { %s1831_s13 = smov (!%p168_p3, %s1238_s13), 1 }
   0xe   : > { %s1584_s22 = smul.u32 576, %s1831_s13  ;;  %s1349_s9 = sshll.u32 %s1831_s13, 5 }
   0xf   : > { %s177_s14 = scalar_lea.vmem %s1828_s2, %s1349_s9  ;;  %s1246_s15 = sshll.u32 %s1831_s13, 1 }
  0x10   : > { %s1660_s25 = scalar_lea.vmem %s1826_s0, %s1584_s22  ;;  %s1819_s18 = scalar_lea.vmem %s1829_s3, %s1246_s15 }
  0x11   : > { %v1247_v6 = vld [vmem:[%s1660_s25 + $0x90] sm:$0xff]  ;;  %v1664_v7 = vld [vmem:[%s1660_s25 + $0xa0] sm:$0xff] }
  0x12   : > { %v1282_v8 = vld [vmem:[%s1660_s25 + $0x1b0] sm:$0xff]  ;;  %v205_v9 = vpack.c.bf16 %v1664_v7, %v1247_v6  ;;  %v1283_v10 = vld [vmem:[%s1660_s25 + $0x1c0] sm:$0xff] }
  0x13   : > { %v1670_v11 = vld [vmem:[%s1660_s25 + $0xb0] sm:$0xff]  ;;  %v1673_v12 = vld [vmem:[%s1660_s25 + $0xc0] sm:$0xff]  ;;  %v587_v13 = vpack.c.bf16 %v1283_v10, %v1282_v8 }
  0x14   : > { %v206_v14 = vpack.c.bf16 %v1673_v12, %v1670_v11  ;;  %v1284_v16 = vld [vmem:[%s1660_s25 + $0x1d0] sm:$0xff]  ;;  %v1285_v17 = vld [vmem:[%s1660_s25 + $0x1e0] sm:$0xff]  ;;  %1420 = vmatprep.mubr.msk.bf16.mxu1 %vm211_vm1, %v205_v9  ;;  %v503_v9 = vsel %vm224_vm0, %v1277_v51, 0 }
  0x15   : > { %v1681_v18 = vld [vmem:[%s1660_s25 + $0xd0] sm:$0xff]  ;;  %v588_v19 = vpack.c.bf16 %v1285_v17, %v1284_v16  ;;  %v1686_v21 = vld [vmem:[%s1660_s25 + $0xe0] sm:$0xff]  ;;  %1460 = vmatprep.mubr.msk.bf16.mxu0 %vm211_vm1, %v587_v13  ;;  %v895_v16 = vpack.c.bf16 %v1670_v11, %v1664_v7 }
  0x16   : > { %1421 = vmatmul.mubr.msk.bf16.vlgmr.msra.gmra.mrb[0].mxu1 %vm211_vm1, %v206_v14  ;;  %v207_v22 = vpack.c.bf16 %v1686_v21, %v1681_v18  ;;  %v1295_v23 = vld [vmem:[%s1660_s25 + $0x121] sm:$0xff]  ;;  %v1296_v24 = vld [vmem:[%s1660_s25 + $0x131] sm:$0xff] }
  0x17   : > { %1429 = vmatpush3.bf16.msra.mxu1 %v306_v15  ;;  %1461 = vmatmul.mubr.msk.bf16.vlgmr.msra.gmra.mrb[0].mxu0 %vm211_vm1, %v588_v19  ;;  %v1699_v26 = vld [vmem:[%s1660_s25 + $0xf0] sm:$0xff]  ;;  %v1702_v27 = vld [vmem:[%s1660_s25 + $0x100] sm:$0xff]  ;;  %v689_v28 = vpack.c.bf16 %v1296_v24, %v1295_v23  ;;  %v896_v23 = vpack.c.bf16 %v1681_v18, %v1673_v12 }
  0x18   : > { %1469 = vmatpush3.bf16.msra.mxu0 %v708_v20  ;;  %1424 = vmatprep.mubr.msk.bf16.mxu1 %vm211_vm1, %v207_v22  ;;  %v183_v30 = vld [vmem:[%s1660_s25] sm:$0xff]  ;;  %v184_v31 = vld [vmem:[%s1660_s25 + $0x10] sm:$0xff]  ;;  %v208_v32 = vpack.c.bf16 %v1702_v27, %v1699_v26 }
  0x19   : > { %1470 = vmatprep.mubr.msk.bf16.mxu0 %vm211_vm1, %v689_v28  ;;  %1581 = vmatprep.subr.msk.bf16.mxu0 %vm224_vm0, %v1316_v25  ;;  %v191_v33 = vpack.c.bf16 %v184_v31, %v183_v30  ;;  %v1297_v34 = vld [vmem:[%s1660_s25 + $0x141] sm:$0xff]  ;;  %v1298_v35 = vld [vmem:[%s1660_s25 + $0x151] sm:$0xff] }
  0x1a   : > { %1576 = vmatprep.subr.msk.bf16.mxu1 %vm224_vm0, %v1264_v29  ;;  %v1299_v36 = vld [vmem:[%s1660_s25 + $0x161] sm:$0xff]  ;;  %v1300_v37 = vld [vmem:[%s1660_s25 + $0x171] sm:$0xff]  ;;  %v690_v38 = vpack.c.bf16 %v1298_v35, %v1297_v34 }
  0x1b   : > { %v185_v39 = vld [vmem:[%s1660_s25 + $0x20] sm:$0xff]  ;;  %v186_v40 = vld [vmem:[%s1660_s25 + $0x30] sm:$0xff]  ;;  %v691_v41 = vpack.c.bf16 %v1300_v37, %v1299_v36 }
  0x1c   : > { %v187_v42 = vld [vmem:[%s1660_s25 + $0x40] sm:$0xff]  ;;  %v188_v43 = vld [vmem:[%s1660_s25 + $0x50] sm:$0xff]  ;;  %v192_v45 = vpack.c.bf16 %v186_v40, %v185_v39  ;;  %v792_v55 = vpack.c.bf16 %v185_v39, %v184_v31 }
  0x1d   : > { %v193_v47 = vpack.c.bf16 %v188_v43, %v187_v42  ;;  %v1301_v49 = vld [vmem:[%s1660_s25 + $0x181] sm:$0xff]  ;;  %v1302_v50 = vld [vmem:[%s1660_s25 + $0x191] sm:$0xff]  ;;  %v793_v60 = vpack.c.bf16 %v187_v42, %v186_v40 }
  0x1e   : > { %1425 = vmatmul.mubr.msk.bf16.gmra.mrb[4].mxu1 %vm211_vm1, %v208_v32  ;;  %v692_v52 = vpack.c.bf16 %v1302_v50, %v1301_v49  ;;  %v189_v53 = vld [vmem:[%s1660_s25 + $0x60] sm:$0xff]  ;;  %v190_v54 = vld [vmem:[%s1660_s25 + $0x70] sm:$0xff] }
  0x1f   : > { %1430 = vmatprep.mubr.msk.bf16.mxu1 %vm211_vm1, %v191_v33  ;;  %v373_v56 = vld [vmem:[%s1660_s25 + $0x1] sm:$0xff]  ;;  %v1744_v57 = vld [vmem:[%s1660_s25 + $0x11] sm:$0xff]  ;;  %v194_v58 = vpack.c.bf16 %v190_v54, %v189_v53  ;;  %v794_v63 = vpack.c.bf16 %v189_v53, %v188_v43 }
  0x20   : > { %v381_v59 = vpack.c.bf16 %v1744_v57, %v373_v56  ;;  %v375_v61 = vld [vmem:[%s1660_s25 + $0x21] sm:$0xff]  ;;  %v376_v62 = vld [vmem:[%s1660_s25 + $0x31] sm:$0xff] }
  0x21   : > { %v377_v0 = vld [vmem:[%s1660_s25 + $0x41] sm:$0xff]  ;;  %v378_v2 = vld [vmem:[%s1660_s25 + $0x51] sm:$0xff]  ;;  %v382_v5 = vpack.c.bf16 %v376_v62, %v375_v61  ;;  %v997_v31 = vpack.c.bf16 %v375_v61, %v1744_v57 }
  0x22   : > { %v1342_v6 = vld [vmem:[%s1827_s1 + $0x10] sm:$0x3]  ;;  %v383_v8 = vpack.c.bf16 %v378_v2, %v377_v0  ;;  %v1315_v10 = vld [vmem:[%s1660_s25 + $0x80] sm:$0xff] }
  0x23   : > { %1471 = vmatmul.mubr.msk.bf16.vlgmr.msra.gmra.mrb[0].mxu0 %vm211_vm1, %v690_v38  ;;  %v795_v13 = vpack.c.bf16 %v1315_v10, %v190_v54  ;;  %v379_v14 = vld [vmem:[%s1660_s25 + $0x61] sm:$0xff]  ;;  %v380_v15 = vld [vmem:[%s1660_s25 + $0x71] sm:$0xff]  ;;  %v1016_v28 = vsel %vm224_vm0, %v1342_v6, 0 }
  0x24   : > { %1479 = vmatpush3.bf16.msra.mxu0 %v811_v44  ;;  %1474 = vmatprep.mubr.msk.bf16.mxu0 %vm211_vm1, %v691_v41  ;;  %v1269_v17 = vld [vmem:[%s1660_s25 + $0x120] sm:$0xff]  ;;  %v1270_v19 = vld [vmem:[%s1660_s25 + $0x130] sm:$0xff]  ;;  %v384_v20 = vpack.c.bf16 %v380_v15, %v379_v14 }
  0x25   : > { %1582 = vmatprep.subr.msk.bf16.mxu0 %vm224_vm0, %v1329_v46  ;;  %v484_v22 = vpack.c.bf16 %v1270_v19, %v1269_v17  ;;  %v1271_v7 = vld [vmem:[%s1660_s25 + $0x140] sm:$0xff]  ;;  %v1272_v11 = vld [vmem:[%s1660_s25 + $0x150] sm:$0xff] }
  0x26   : > { %1431 = vmatmul.mubr.msk.bf16.vlgmr.msra.gmra.mrb[0].mxu1 %vm211_vm1, %v192_v45  ;;  %v1273_v24 = vld [vmem:[%s1660_s25 + $0x160] sm:$0xff]  ;;  %v1274_v25 = vld [vmem:[%s1660_s25 + $0x170] sm:$0xff]  ;;  %v485_v29 = vpack.c.bf16 %v1272_v11, %v1271_v7 }
  0x27   : > { %1439 = vmatpush3.bf16.msra.mxu1 %v400_v48  ;;  %1434 = vmatprep.mubr.msk.bf16.mxu1 %vm211_vm1, %v193_v47  ;;  %v486_v30 = vpack.c.bf16 %v1274_v25, %v1273_v24  ;;  %v1328_v12 = vld [vmem:[%s1660_s25 + $0x110] sm:$0xff]  ;;  %v1287_v33 = vld [vmem:[%s1660_s25 + $0x200] sm:$0xff] }
  0x28   : > { %1577 = vmatprep.subr.msk.bf16.mxu1 %vm224_vm0, %v1277_v51  ;;  %v898_v18 = vpack.c.bf16 %v1328_v12, %v1702_v27  ;;  %v1286_v32 = vld [vmem:[%s1660_s25 + $0x1f0] sm:$0xff]  ;;  %v999_v27 = vpack.c.bf16 %v379_v14, %v378_v2  ;;  %v1289_v37 = vld [vmem:[%s1660_s25 + $0x220] sm:$0xff] }
  0x29   : > { %v589_v35 = vpack.c.bf16 %v1287_v33, %v1286_v32  ;;  %v1288_v36 = vld [vmem:[%s1660_s25 + $0x210] sm:$0xff]  ;;  %v1341_v38 = vld [vmem:[%s1660_s25 + $0x81] sm:$0xff] }
  0x2a   : > { %v590_v39 = vpack.c.bf16 %v1289_v37, %v1288_v36  ;;  %v1000_v40 = vpack.c.bf16 %v1341_v38, %v380_v15 }
  0x2b   : > { %1475 = vmatmul.mubr.msk.bf16.gmra.mrb[4].mxu0 %vm211_vm1, %v692_v52 }
  0x2c   : > { %1480 = vmatprep.mubr.msk.bf16.mxu0 %vm211_vm1, %v792_v55 }
  0x2e   : > { %1435 = vmatmul.mubr.msk.bf16.gmra.mrb[4].mxu1 %vm211_vm1, %v194_v58 }
  0x2f   : > { %1440 = vmatprep.mubr.msk.bf16.mxu1 %vm211_vm1, %v381_v59 }
  0x33   : > { %1481 = vmatmul.mubr.msk.bf16.vlgmr.msra.gmra.mrb[0].mxu0 %vm211_vm1, %v793_v60 }
  0x34   : > { %1489 = vmatpush3.bf16.msra.mxu0 %v914_v4  ;;  %1484 = vmatprep.mubr.msk.bf16.mxu0 %vm211_vm1, %v794_v63 }
  0x35   : > { %1583 = vmatprep.subr.msk.bf16.mxu0 %vm224_vm0, %v1342_v6 }
  0x36   : > { %1441 = vmatmul.mubr.msk.bf16.vlgmr.msra.gmra.mrb[0].mxu1 %vm211_vm1, %v382_v5 }
  0x37   : > { %1449 = vmatpush3.bf16.msra.mxu1 %v503_v9  ;;  %1444 = vmatprep.mubr.msk.bf16.mxu1 %vm211_vm1, %v383_v8 }
  0x38   : > { %1579 = vmatprep.subr.msk.bf16.mxu1 %vm224_vm0, %v1635_v1  ;;  %v897_v1 = vpack.c.bf16 %v1699_v26, %v1686_v21  ;;  %v1275_v21 = vld [vmem:[%s1660_s25 + $0x180] sm:$0xff]  ;;  %v1276_v26 = vld [vmem:[%s1660_s25 + $0x190] sm:$0xff] }
  0x39   : > { %v487_v34 = vpack.c.bf16 %v1276_v26, %v1275_v21 }
  0x3b   : > { %1485 = vmatmul.mubr.msk.bf16.gmra.mrb[4].mxu0 %vm211_vm1, %v795_v13 }
  0x3c   : > { %1490 = vmatprep.mubr.msk.bf16.mxu0 %vm211_vm1, %v895_v16 }
  0x3e   : > { %1445 = vmatmul.mubr.msk.bf16.gmra.mrb[4].mxu1 %vm211_vm1, %v384_v20 }
  0x3f   : > { %1450 = vmatprep.mubr.msk.bf16.mxu1 %vm211_vm1, %v484_v22 }
  0x43   : > { %1491 = vmatmul.mubr.msk.bf16.vlgmr.msra.gmra.mrb[0].mxu0 %vm211_vm1, %v896_v23 }
  0x44   : > { %1499 = vmatpush3.bf16.msra.mxu0 %v1016_v28  ;;  %1494 = vmatprep.mubr.msk.bf16.mxu0 %vm211_vm1, %v897_v1 }
  0x46   : > { %1451 = vmatmul.mubr.msk.bf16.vlgmr.msra.gmra.mrb[0].mxu1 %vm211_vm1, %v485_v29 }
  0x47   : > { %1509 = vmatpush3.bf16.msra.mxu1 %v1643_v3  ;;  %1454 = vmatprep.mubr.msk.bf16.mxu1 %vm211_vm1, %v486_v30  ;;  %v998_v3 = vpack.c.bf16 %v377_v0, %v376_v62 }
  0x4b   : > { %1495 = vmatmul.mubr.msk.bf16.gmra.mrb[4].mxu0 %vm211_vm1, %v898_v18 }
  0x4c   : > { %1500 = vmatprep.mubr.msk.bf16.mxu0 %vm211_vm1, %v997_v31 }
  0x4e   : > { %1455 = vmatmul.mubr.msk.bf16.gmra.mrb[4].mxu1 %vm211_vm1, %v487_v34 }
  0x4f   : > { %1464 = vmatprep.mubr.msk.bf16.mxu1 %vm211_vm1, %v589_v35 }
  0x53   : > { %1501 = vmatmul.mubr.msk.bf16.vlgmr.msra.gmra.mrb[0].mxu0 %vm211_vm1, %v998_v3 }
  0x54   : > { %1504 = vmatprep.mubr.msk.bf16.mxu0 %vm211_vm1, %v999_v27 }
  0x5a   : > { %1465 = vmatmul.mubr.msk.bf16.vlgmr.msra.gmra.mrb[4].mxu1 %vm211_vm1, %v590_v39 }
  0x5b   : > { %1505 = vmatmul.mubr.msk.bf16.gmra.mrb[4].mxu0 %vm211_vm1, %v1000_v40 }
 0x119   : > { %v1452_v41 = vpop.f32.mrb[0].mxu1 }
 0x11a   : > { %v539_v42 = vpop.f32.mrb[1].mxu1 }
 0x11b   : > { %v1453_v43 = vpop.f32.mrb[2].mxu1 }
 0x11c   : > { %v542_v44 = vpop.f32.mrb[3].mxu1 }
 0x126   : > { %v1502_v45 = vpop.f32.mrb[0].mxu0 }
 0x127   : > { %v1510_v46 = vadd.f32 %v1502_v45, %v1452_v41  ;;  %v1052_v47 = vpop.f32.mrb[1].mxu0 }
 0x128   : > { %v1511_v48 = vadd.f32 %v1052_v47, %v539_v42  ;;  %v1503_v49 = vpop.f32.mrb[2].mxu0 }
 0x129   : > { %v1512_v50 = vadd.f32 %v1503_v49, %v1453_v43  ;;  %v1055_v51 = vpop.f32.mrb[3].mxu0 }
 0x12a   : > { %v1513_v52 = vadd.f32 %v1055_v51, %v542_v44 }
 0x12b   : > { %v1358_v53 = vpack.c.bf16 %v1512_v50, %v1510_v46 }
 0x12c   : > { %v1353_v54 = vpack.c.bf16 %v1513_v52, %v1511_v48  ;;  %v1107_v55 = vadd.f32 %v1513_v52, %v1511_v48 }
 0x12d   : > { %1370 = vst [vmem:[%s177_s14 + $0x8] sm:$0xff] %v1358_v53   ;;  %v1466_v56 = vpop.f32.mrb[4].mxu1 }
 0x12e   : > { %1354 = vst [vmem:[%s177_s14] sm:$0xff] %v1353_v54   ;;  %v1108_v57 = vadd.f32 %v1510_v46, %v1107_v55  ;;  %v1506_v58 = vpop.f32.mrb[4].mxu0  ;;  %v658_v59 = vpop.f32.mrb[5].mxu1 }
 0x12f   : > { %v1514_v60 = vadd.f32 %v1506_v58, %v1466_v56  ;;  %v1068_v61 = vpop.f32.mrb[5].mxu0  ;;  %v1467_v62 = vpop.f32.mrb[6].mxu1 }
 0x130   : > { %v1515_v63 = vadd.f32 %v1068_v61, %v658_v59  ;;  %v1109_v0 = vadd.f32 %v1512_v50, %v1108_v57  ;;  %v1507_v2 = vpop.f32.mrb[6].mxu0  ;;  %v661_v4 = vpop.f32.mrb[7].mxu1 }
 0x131   : > { %v1516_v5 = vadd.f32 %v1507_v2, %v1467_v62  ;;  %v1071_v6 = vpop.f32.mrb[7].mxu0 }
 0x132   : > { %v1110_v8 = vadd.f32 %v1515_v63, %v1109_v0  ;;  %v1517_v9 = vadd.f32 %v1071_v6, %v661_v4 }
 0x133   : > { %v1368_v10 = vpack.c.bf16 %v1516_v5, %v1514_v60 }
 0x134   : > { %v1363_v13 = vpack.c.bf16 %v1517_v9, %v1515_v63  ;;  %v1111_v14 = vadd.f32 %v1517_v9, %v1110_v8 }
 0x135   : > { %1372 = vst [vmem:[%s177_s14 + $0x18] sm:$0xff] %v1368_v10  }
 0x136   : > { %1371 = vst [vmem:[%s177_s14 + $0x10] sm:$0xff] %v1363_v13   ;;  %v1112_v15 = vadd.f32 %v1514_v60, %v1111_v14 }
 0x138   : > { %v1113_v16 = vadd.f32 %v1516_v5, %v1112_v15 }
 0x13a   : > { %v1114_v17 = vrot.slane %v1113_v16, 4 }
 0x13c   : > { %v1115_v19 = vadd.f32 %v1114_v17, %v1113_v16 }
 0x13e   : > { %v1116_v20 = vrot.slane %v1115_v19, 2 }
 0x140   : > { %v1117_v22 = vadd.f32 %v1116_v20, %v1115_v19 }
 0x142   : > { %v1118_v23 = vrot.slane %v1117_v22, 1 }
 0x144   : > { %v1119_v7 = vadd.f32 %v1118_v23, %v1117_v22 }
 0x146   : > { %v1120_v11 = vmul.f32 0.015625, %v1119_v7  ;;  %1129 = vst [vmem:[%s1819_s18] sm:$0x1] %v1119_v7 }
 0x148   : > { %v1121_v1 = vsub.f32 %v1511_v48, %v1120_v11  ;;  %v1122_v24 = vsub.f32 %v1513_v52, %v1120_v11  ;;  %v1123_v25 = vsub.f32 %v1510_v46, %v1120_v11  ;;  %v1124_v28 = vsub.f32 %v1512_v50, %v1120_v11 }
 0x149   : > { %v1125_v29 = vsub.f32 %v1515_v63, %v1120_v11  ;;  %v1126_v30 = vsub.f32 %v1517_v9, %v1120_v11  ;;  %v1127_v12 = vsub.f32 %v1514_v60, %v1120_v11  ;;  %v1128_v18 = vsub.f32 %v1516_v5, %v1120_v11 }
 0x14a   : > { %v1130_v21 = vmul.f32 %v1121_v1, %v1121_v1  ;;  %v1131_v26 = vmul.f32 %v1122_v24, %v1122_v24  ;;  %v1132_v31 = vmul.f32 %v1123_v25, %v1123_v25  ;;  %v1133_v33 = vmul.f32 %v1124_v28, %v1124_v28 }
 0x14b   : > { %v1134_v35 = vmul.f32 %v1125_v29, %v1125_v29  ;;  %v1135_v27 = vmul.f32 %v1126_v30, %v1126_v30  ;;  %v1136_v37 = vmul.f32 %v1127_v12, %v1127_v12  ;;  %v1137_v39 = vmul.f32 %v1128_v18, %v1128_v18 }
 0x14c   : > { %v1138_v32 = vadd.f32 %v1131_v26, %v1130_v21 }
 0x14e   : > { %v1139_v34 = vadd.f32 %v1138_v32, %v1132_v31 }
 0x150   : > { %v1140_v3 = vadd.f32 %v1139_v34, %v1133_v33 }
 0x152   : > { %v1141_v36 = vadd.f32 %v1140_v3, %v1134_v35 }
 0x154   : > { %v1142_v38 = vadd.f32 %v1141_v36, %v1135_v27 }
 0x156   : > { %v1143_v40 = vadd.f32 %v1142_v38, %v1136_v37 }
 0x158   : > { %v1144_v41 = vadd.f32 %v1143_v40, %v1137_v39 }
 0x15a   : > { %v1145_v42 = vrot.slane %v1144_v41, 4 }
 0x15c   : > { %v1146_v43 = vadd.f32 %v1145_v42, %v1144_v41 }
 0x15e   : > { %v1147_v44 = vrot.slane %v1146_v43, 2 }
 0x160   : > { %v1148_v45 = vadd.f32 %v1147_v44, %v1146_v43 }
 0x162   : > { %v1149_v46 = vrot.slane %v1148_v45, 1 }
 0x164   : > { %v1150_v47 = vadd.f32 %v1149_v46, %v1148_v45 }
 0x166   : > { %1151 = vst [vmem:[%s1819_s18 + $0x1] sm:$0x1] %v1150_v47 }
 0x167 PF: > { %s14_s12 = sadd.s32 1, %s1599_s12  }
 0x168   : > { %p11_p4 = scmp.ge.s32.totalorder %s14_s12, 4  }
 0x16a   :  { %13 = sbr.rel (!%p11_p4) target bundleno = 1 (0x1), region = 83 }

// kernel: residual_block_forward.4
= control target key start
LH: loop header
LB: loop body
LE: loop exit
PB: predicated region body
PF: predicated region fallthrough
CT: control target
= control target key end

     0   :  { %s2583_s18 = smov 0   ;;  %s2992_s0 = inlined_call_operand.vmem [shape: bf16[2,8,8,128], index: 0, kind: input, shape index: {}]   ;;  %s2993_s1 = inlined_call_operand.vmem [shape: f32[1,128], index: 1, kind: input, shape index: {}]   ;;  %s2994_s2 = inlined_call_operand.vmem [shape: f32[1,128], index: 2, kind: input, shape index: {}]   ;;  %s2995_s3 = inlined_call_operand.vmem [shape: bf16[9,128,128], index: 3, kind: input, shape index: {}]   ;;  %s2996_s4 = inlined_call_operand.vmem [shape: bf16[2,8,8,128], index: 4, kind: output, shape index: {0}]   ;;  %s2997_s5 = inlined_call_operand.vmem [shape: f32[2,2,128], index: 5, kind: output, shape index: {1}]  }
   0x1 LB: > { %s1801_s19 = sadd.s32 4294967295, %s2550_s18   ;;  %p1805_p0 = scmp.ge.s32.totalorder %s2550_s18, 1  ;;  %s2550_s18 = sphi %s2583_s18, %s16_s18  }
   0x2   : > { %p190_p1 = scmp.lt.s32.totalorder %s2550_s18, 3 }
   0x4   : > { %p191_p2 = pnand %p1805_p0, %p190_p1 }
   0x5   : > { %v2472_v0 = vld [vmem:[%s2995_s3 + $0x40] sm:$0xff] (!%p191_p2)   ;;  %v2474_v2 = vld [vmem:[%s2995_s3 + $0x48] sm:$0xff] (!%p191_p2)   ;;  %p2602_p3 = scmp.lt.s32.totalorder (!%p191_p2), %s1801_s19, 1  ;;  %v2552_v3 = vmov (!%p191_p2), 0.0   ;;  %v2476_v5 = vld [vmem:[%s2995_s3 + $0x50] sm:$0xff] (!%p191_p2)  }
   0x6   : > { %194 = sbr.rel (%p191_p2) target bundleno = 443 (0x1bb), region = 36  ;;  %v2473_v1 = vld [vmem:[%s2995_s3 + $0x100] sm:$0xff] (!%p191_p2)   ;;  %2167 = vmatprep.subr.bf16.mxu1 (!%p191_p2), %v2472_v0  ;;  %237 = vst [vmem:[#allocation2] sm:$0xff] (!%p191_p2), %v2552_v3  ;;  %238 = vst [vmem:[#allocation2 + $0x8] sm:$0x3] (!%p191_p2), %v2552_v3  ;;  %v2475_v4 = vld [vmem:[%s2995_s3 + $0x108] sm:$0xff] (!%p191_p2)  }
   0x7   : > { %239 = vst [vmem:[#allocation2 + $0x10] sm:$0xff] (!%p191_p2), %v2552_v3  ;;  %240 = vst [vmem:[#allocation2 + $0x18] sm:$0x3] (!%p191_p2), %v2552_v3  ;;  %2263 = vmatprep.subr.bf16.mxu0 (!%p191_p2), %v2473_v1  ;;  %2168 = vmatpush3.bf16.msra.mxu1 (!%p191_p2), %v2472_v0  ;;  %v2477_v6 = vld [vmem:[%s2995_s3 + $0x110] sm:$0xff] (!%p191_p2)   ;;  %v2478_v7 = vld [vmem:[%s2995_s3 + $0x58] sm:$0xff] (!%p191_p2)  }
   0x8   : > { %241 = vst [vmem:[#allocation2 + $0x20] sm:$0xff] (!%p191_p2), %v2552_v3  ;;  %242 = vst [vmem:[#allocation2 + $0x28] sm:$0x3] (!%p191_p2), %v2552_v3  ;;  %2264 = vmatpush3.bf16.msra.mxu0 (!%p191_p2), %v2473_v1  ;;  %2169 = vmatprep.subr.bf16.mxu1 (!%p191_p2), %v2474_v2  ;;  %v2479_v8 = vld [vmem:[%s2995_s3 + $0x118] sm:$0xff] (!%p191_p2)   ;;  %v2480_v9 = vld [vmem:[%s2995_s3 + $0x60] sm:$0xff] (!%p191_p2)  }
   0x9   : > { %243 = vst [vmem:[#allocation2 + $0x30] sm:$0xff] (!%p191_p2), %v2552_v3  ;;  %244 = vst [vmem:[#allocation2 + $0x38] sm:$0x3] (!%p191_p2), %v2552_v3  ;;  %2265 = vmatprep.subr.bf16.mxu0 (!%p191_p2), %v2475_v4  ;;  %v2481_v10 = vld [vmem:[%s2995_s3 + $0x120] sm:$0xff] (!%p191_p2)   ;;  %v2482_v11 = vld [vmem:[%s2995_s3 + $0x68] sm:$0xff] (!%p191_p2)  }
   0xa   : > { %245 = vst [vmem:[#allocation2 + $0x40] sm:$0xff] (!%p191_p2), %v2552_v3  ;;  %246 = vst [vmem:[#allocation2 + $0x48] sm:$0x3] (!%p191_p2), %v2552_v3  ;;  %v2668_v13 = vld [vmem:[%s2993_s1] ss:$0 sm:$0xff] (!%p191_p2)  ;;  %v2483_v14 = vld [vmem:[%s2995_s3 + $0x128] sm:$0xff] (!%p191_p2)  }
   0xb   : > { %247 = vst [vmem:[#allocation2 + $0x50] sm:$0xff] (!%p191_p2), %v2552_v3  ;;  %248 = vst [vmem:[#allocation2 + $0x58] sm:$0x3] (!%p191_p2), %v2552_v3  ;;  %2170 = vmatpush3.bf16.msra.mxu1 (!%p191_p2), %v2474_v2  ;;  %v2676_v17 = vld [vmem:[%s2994_s2] ss:$0 sm:$0xff] (!%p191_p2)  ;;  %v2484_v21 = vld [vmem:[%s2995_s3 + $0x70] sm:$0xff] (!%p191_p2)  }
   0xc   : > { %249 = vst [vmem:[#allocation2 + $0x60] sm:$0xff] (!%p191_p2), %v2552_v3  ;;  %250 = vst [vmem:[#allocation2 + $0x68] sm:$0x3] (!%p191_p2), %v2552_v3  ;;  %2266 = vmatpush3.bf16.msra.mxu0 (!%p191_p2), %v2475_v4  ;;  %2171 = vmatprep.subr.bf16.mxu1 (!%p191_p2), %v2476_v5  ;;  %v2485_v24 = vld [vmem:[%s2995_s3 + $0x130] sm:$0xff] (!%p191_p2)   ;;  %v2486_v30 = vld [vmem:[%s2995_s3 + $0x78] sm:$0xff] (!%p191_p2)  }
   0xd   : > { %251 = vst [vmem:[#allocation2 + $0x70] sm:$0xff] %v2552_v3  ;;  %252 = vst [vmem:[#allocation2 + $0x78] sm:$0x3] %v2552_v3  ;;  %s3000_s19 = smov (!%p2602_p3, %s1801_s19), 1  ;;  %2267 = vmatprep.subr.bf16.mxu0 %v2477_v6  ;;  %v348_v27 = vld [vmem:[#allocation2 + $0x1] sm:$0xff]  ;;  %v2487_v35 = vld [vmem:[%s2995_s3 + $0x138] sm:$0xff]  }
   0xe   : > { %253 = vst [vmem:[#allocation2 + $0x80] sm:$0xff] %v2552_v3  ;;  %254 = vst [vmem:[#allocation2 + $0x88] sm:$0x3] %v2552_v3  ;;  %s2015_s12 = sshll.u32 %s3000_s19, 5  ;;  %v2488_v40 = vld [vmem:[%s2995_s3] sm:$0xff]   ;;  %v2490_v47 = vld [vmem:[%s2995_s3 + $0x8] sm:$0xff]  }
   0xf   : > { %255 = vst [vmem:[#allocation2 + $0x90] sm:$0xff] %v2552_v3  ;;  %256 = vst [vmem:[#allocation2 + $0x98] sm:$0x3] %v2552_v3  ;;  %2172 = vmatpush3.bf16.msra.mxu1 %v2476_v5  ;;  %s2659_s21 = scalar_lea.vmem %s2992_s0, %s2015_s12  ;;  %v2489_v41 = vld [vmem:[%s2995_s3 + $0x140] sm:$0xff]   ;;  %v2491_v51 = vld [vmem:[%s2995_s3 + $0x148] sm:$0xff]   ;;  %s231_s20 = scalar_lea.vmem %s2996_s4, %s2015_s12 }
  0x10   : > { %2268 = vmatpush3.bf16.msra.mxu0 %v2477_v6  ;;  %2173 = vmatprep.subr.bf16.mxu1 %v2478_v7  ;;  %v2018_v12 = vld [vmem:[%s2659_s21] sm:$0xff]   ;;  %v2053_v20 = vld [vmem:[%s2659_s21 + $0x8] sm:$0xff]   ;;  %v2054_v42 = vld [vmem:[%s2659_s21 + $0x10] sm:$0xff]   ;;  %s1810_s12 = sshll.u32 %s3000_s19, 1 }
  0x11   : > { %2269 = vmatprep.subr.bf16.mxu0 %v2479_v8  ;;  %v2019_v15 = vunpack.c.l.bf16 %v2018_v12  ;;  %v2020_v16 = vunpack.c.h.bf16 %v2018_v12  ;;  %v2023_v22 = vunpack.c.l.bf16 %v2053_v20  ;;  %v2024_v23 = vunpack.c.h.bf16 %v2053_v20  ;;  %v2055_v50 = vld [vmem:[%s2659_s21 + $0x18] sm:$0xff]   ;;  %v2492_v58 = vld [vmem:[%s2995_s3 + $0x10] sm:$0xff]   ;;  %s2985_s24 = scalar_lea.vmem %s2997_s5, %s1810_s12 }
  0x12   : > { %v2027_v44 = vunpack.c.l.bf16 %v2054_v42  ;;  %v2028_v45 = vunpack.c.h.bf16 %v2054_v42  ;;  %v2031_v52 = vunpack.c.l.bf16 %v2055_v50  ;;  %v2032_v53 = vunpack.c.h.bf16 %v2055_v50  ;;  %v2493_v61 = vld [vmem:[%s2995_s3 + $0x150] sm:$0xff]   ;;  %v2494_v0 = vld [vmem:[%s2995_s3 + $0x18] sm:$0xff]  }
  0x13   : > { %2174 = vmatpush3.bf16.msra.mxu1 %v2478_v7  ;;  %v280_v18 = vmul.f32 %v2019_v15, %v2668_v13  ;;  %v281_v19 = vmul.f32 %v2020_v16, %v2668_v13  ;;  %v282_v28 = vmul.f32 %v2023_v22, %v2668_v13  ;;  %v283_v29 = vmul.f32 %v2024_v23, %v2668_v13  ;;  %v2497_v15 = vld [vmem:[%s2995_s3 + $0x160] sm:$0xff]   ;;  %v2498_v16 = vld [vmem:[%s2995_s3 + $0x28] sm:$0xff]   ;;  %v2502_v20 = vld [vmem:[%s2995_s3 + $0x38] sm:$0xff]  }
  0x14   : > { %2270 = vmatpush3.bf16.msra.mxu0 %v2479_v8  ;;  %2175 = vmatprep.subr.bf16.mxu1 %v2480_v9  ;;  %v284_v48 = vmul.f32 %v2027_v44, %v2668_v13  ;;  %v285_v49 = vmul.f32 %v2028_v45, %v2668_v13  ;;  %v286_v56 = vmul.f32 %v2031_v52, %v2668_v13  ;;  %v2509_v44 = vld [vmem:[%s2995_s3 + $0x190] sm:$0xff]   ;;  %v2513_v52 = vld [vmem:[%s2995_s3 + $0x1a0] sm:$0xff]  }
  0x15   : > { %2271 = vmatprep.subr.bf16.mxu0 %v2481_v10  ;;  %v295_v25 = vadd.f32 %v2676_v17, %v280_v18  ;;  %v296_v26 = vadd.f32 %v2676_v17, %v281_v19  ;;  %v297_v33 = vadd.f32 %v2676_v17, %v282_v28  ;;  %v298_v34 = vadd.f32 %v2676_v17, %v283_v29  ;;  %v2500_v18 = vld [vmem:[%s2995_s3 + $0x30] sm:$0xff]  }
  0x16   : > { %v299_v54 = vadd.f32 %v2676_v17, %v284_v48  ;;  %v300_v55 = vadd.f32 %v2676_v17, %v285_v49  ;;  %v287_v57 = vmul.f32 %v2032_v53, %v2668_v13  ;;  %v301_v62 = vadd.f32 %v2676_v17, %v286_v56  ;;  %v2501_v19 = vld [vmem:[%s2995_s3 + $0x170] sm:$0xff]   ;;  %v2510_v48 = vld [vmem:[%s2995_s3 + $0x98] sm:$0xff]   ;;  %v2514_v53 = vld [vmem:[%s2995_s3 + $0xa8] sm:$0xff]  }
  0x17   : > { %2176 = vmatpush3.bf16.msra.mxu1 %v2480_v9  ;;  %v303_v31 = vmax.f32 %v295_v25, 0.0  ;;  %v304_v32 = vmax.f32 %v296_v26, 0.0  ;;  %v305_v38 = vmax.f32 %v297_v33, 0.0  ;;  %v306_v39 = vmax.f32 %v298_v34, 0.0  ;;  %v2495_v9 = vld [vmem:[%s2995_s3 + $0x158] sm:$0xff]   ;;  %v2505_v26 = vld [vmem:[%s2995_s3 + $0x180] sm:$0xff]  }
  0x18   : > { %2272 = vmatpush3.bf16.msra.mxu0 %v2481_v10  ;;  %2177 = vmatprep.subr.bf16.mxu1 %v2482_v11  ;;  %v307_v59 = vmax.f32 %v299_v54, 0.0  ;;  %v308_v60 = vmax.f32 %v300_v55, 0.0  ;;  %v302_v63 = vadd.f32 %v2676_v17, %v287_v57  ;;  %v309_v5 = vmax.f32 %v301_v62, 0.0  ;;  %v2499_v17 = vld [vmem:[%s2995_s3 + $0x168] sm:$0xff]   ;;  %v2511_v49 = vld [vmem:[%s2995_s3 + $0x198] sm:$0xff]   ;;  %v2516_v55 = vld [vmem:[%s2995_s3 + $0xb0] sm:$0xff]  }
  0x19   : > { %2273 = vmatprep.subr.bf16.mxu0 %v2483_v14  ;;  %312 = vst [vmem:[#allocation2 + $0x11] sm:$0xff] %v303_v31  ;;  %v356_v36 = vpack.c.bf16 %v303_v31, %v348_v27  ;;  %313 = vst [vmem:[#allocation2 + $0x21] sm:$0xff] %v304_v32  ;;  %v911_v37 = vpack.c.bf16 %v304_v32, %v303_v31  ;;  %v2706_v43 = vpack.c.bf16 %v305_v38, %v304_v32  ;;  %v2506_v34 = vld [vmem:[%s2995_s3 + $0x88] sm:$0xff]   ;;  %v2517_v56 = vld [vmem:[%s2995_s3 + $0x1b0] sm:$0xff]  }
  0x1a   : > { %314 = vst [vmem:[#allocation2 + $0x31] sm:$0xff] %v305_v38  ;;  %315 = vst [vmem:[#allocation2 + $0x41] sm:$0xff] %v306_v39  ;;  %v912_v46 = vpack.c.bf16 %v306_v39, %v305_v38  ;;  %v2733_v1 = vpack.c.bf16 %v307_v59, %v306_v39  ;;  %v913_v2 = vpack.c.bf16 %v308_v60, %v307_v59  ;;  %v2737_v6 = vmax.f32 %v302_v63, 0.0  ;;  %v2515_v54 = vld [vmem:[%s2995_s3 + $0x1a8] sm:$0xff]   ;;  %v2518_v57 = vld [vmem:[%s2995_s3 + $0xb8] sm:$0xff]  }
  0x1b   : > { %2178 = vmatpush3.bf16.msra.mxu1 %v2482_v11  ;;  %2183 = vmatprep.mubr.bf16.mxu1 %v356_v36  ;;  %316 = vst [vmem:[#allocation2 + $0x51] sm:$0xff] %v307_v59  ;;  %317 = vst [vmem:[#allocation2 + $0x61] sm:$0xff] %v308_v60  ;;  %v2747_v10 = vpack.c.bf16 %v309_v5, %v308_v60  ;;  %v2520_v59 = vld [vmem:[%s2995_s3 + $0xc0] sm:$0xff]   ;;  %v2522_v62 = vld [vmem:[%s2995_s3 + $0xc8] sm:$0xff]  }
  0x1c   : > { %2274 = vmatpush3.bf16.msra.mxu0 %v2483_v14  ;;  %2179 = vmatprep.subr.bf16.mxu1 %v2484_v21  ;;  %318 = vst [vmem:[#allocation2 + $0x71] sm:$0xff] %v309_v5  ;;  %319 = vst [vmem:[#allocation2 + $0x81] sm:$0xff] %v2737_v6  ;;  %v914_v11 = vpack.c.bf16 %v2737_v6, %v309_v5  ;;  %v2496_v14 = vld [vmem:[%s2995_s3 + $0x20] sm:$0xff]   ;;  %v2523_v63 = vld [vmem:[%s2995_s3 + $0x1c8] sm:$0xff]  }
  0x1d   : > { %2275 = vmatprep.subr.bf16.mxu0 %v2485_v24  ;;  %2279 = vmatprep.mubr.bf16.mxu0 %v911_v37  ;;  %v2508_v37 = vld [vmem:[%s2995_s3 + $0x90] sm:$0xff]   ;;  %v2521_v60 = vld [vmem:[%s2995_s3 + $0x1c0] sm:$0xff]  }
  0x1f   : > { %2180 = vmatpush3.bf16.msra.mxu1 %v2484_v21  ;;  %v2503_v21 = vld [vmem:[%s2995_s3 + $0x178] sm:$0xff]  }
  0x20   : > { %2276 = vmatpush3.bf16.msra.mxu0 %v2485_v24  ;;  %2181 = vmatprep.subr.bf16.mxu1 %v2486_v30  ;;  %v2735_v4 = vld [vmem:[#allocation2 + $0x10] sm:$0xff]  ;;  %v2741_v8 = vld [vmem:[#allocation2 + $0x22] sm:$0xff] }
  0x21   : > { %2277 = vmatprep.subr.bf16.mxu0 %v2487_v35  ;;  %v2739_v7 = vld [vmem:[#allocation2 + $0x12] sm:$0xff]  ;;  %v328_v12 = vpack.c.bf16 %v2735_v4, %v2552_v3  ;;  %v2780_v22 = vld [vmem:[#allocation2 + $0x20] sm:$0xff] }
  0x22   : > { %v1061_v13 = vpack.c.bf16 %v2741_v8, %v2739_v7  ;;  %v2782_v23 = vld [vmem:[#allocation2 + $0x30] sm:$0xff]  ;;  %v2504_v24 = vld [vmem:[%s2995_s3 + $0x80] sm:$0xff]  }
  0x23   : > { %2182 = vmatpush3.bf16.msra.mxu1 %v2486_v30  ;;  %v2787_v25 = vld [vmem:[#allocation2 + $0x32] sm:$0xff]  ;;  %v2792_v27 = vld [vmem:[#allocation2 + $0x42] sm:$0xff]  ;;  %v329_v30 = vpack.c.bf16 %v2782_v23, %v2780_v22 }
  0x24   : > { %2278 = vmatpush3.bf16.msra.mxu0 %v2487_v35  ;;  %2191 = vmatprep.subr.bf16.mxu1 %v2488_v40  ;;  %v2794_v28 = vld [vmem:[#allocation2 + $0x40] sm:$0xff]  ;;  %v2796_v29 = vld [vmem:[#allocation2 + $0x50] sm:$0xff]  ;;  %v1062_v32 = vpack.c.bf16 %v2792_v27, %v2787_v25  ;;  %v2507_v35 = vld [vmem:[%s2995_s3 + $0x188] sm:$0xff]  }
  0x25   : > { %2287 = vmatprep.subr.bf16.mxu0 %v2489_v41  ;;  %v2800_v31 = vld [vmem:[#allocation2 + $0x52] sm:$0xff]  ;;  %v2804_v33 = vld [vmem:[#allocation2 + $0x62] sm:$0xff]  ;;  %v2814_v36 = vpack.c.bf16 %v2796_v29, %v2794_v28 }
  0x26   : > { %2184 = vmatmul.mubr.bf16.vlgmr.msra.gmra.mrb[0].mxu1 %v2706_v43  ;;  %v1063_v38 = vpack.c.bf16 %v2804_v33, %v2800_v31  ;;  %v2821_v39 = vld [vmem:[#allocation2 + $0x60] sm:$0xff] }
  0x27   : > { %2192 = vmatpush3.bf16.msra.mxu1 %v2488_v40  ;;  %2280 = vmatmul.mubr.bf16.vlgmr.msra.gmra.mrb[0].mxu0 %v912_v46  ;;  %v2823_v40 = vld [vmem:[#allocation2 + $0x70] sm:$0xff]  ;;  %v2827_v42 = vld [vmem:[#allocation2 + $0x82] sm:$0xff] }
  0x28   : > { %2288 = vmatpush3.bf16.msra.mxu0 %v2489_v41  ;;  %2193 = vmatprep.subr.bf16.mxu1 %v2490_v47  ;;  %v2825_v41 = vld [vmem:[#allocation2 + $0x72] sm:$0xff]  ;;  %v331_v45 = vpack.c.bf16 %v2823_v40, %v2821_v39  ;;  %v603_v46 = vld [vmem:[#allocation2 + $0x2] sm:$0xff] }
  0x29   : > { %2289 = vmatprep.subr.bf16.mxu0 %v2491_v51  ;;  %2187 = vmatprep.mubr.bf16.mxu1 %v2733_v1  ;;  %v611_v50 = vpack.c.bf16 %v2739_v7, %v603_v46  ;;  %v2893_v5 = vld [vmem:[#allocation2 + $0x80] sm:$0xff]  ;;  %v2525_v7 = vld [vmem:[%s2995_s3 + $0x1d0] sm:$0xff]  }
  0x2a   : > { %2283 = vmatprep.mubr.bf16.mxu0 %v913_v2  ;;  %v2524_v2 = vld [vmem:[%s2995_s3 + $0xd0] sm:$0xff]  }
  0x2b   : > { %2194 = vmatpush3.bf16.msra.mxu1 %v2490_v47  ;;  %v1064_v47 = vpack.c.bf16 %v2827_v42, %v2825_v41 }
  0x2c   : > { %2290 = vmatpush3.bf16.msra.mxu0 %v2491_v51  ;;  %2195 = vmatprep.subr.bf16.mxu1 %v2492_v58  ;;  %v2512_v51 = vld [vmem:[%s2995_s3 + $0xa0] sm:$0xff]  }
  0x2d   : > { %2291 = vmatprep.subr.bf16.mxu0 %v2493_v61 }
  0x2e   : > { %2188 = vmatmul.mubr.bf16.gmra.mrb[4].mxu1 %v2747_v10 }
  0x2f   : > { %2196 = vmatpush3.bf16.msra.mxu1 %v2492_v58  ;;  %2284 = vmatmul.mubr.bf16.gmra.mrb[4].mxu0 %v914_v11  ;;  %v2519_v58 = vld [vmem:[%s2995_s3 + $0x1b8] sm:$0xff]  }
  0x30   : > { %2292 = vmatpush3.bf16.msra.mxu0 %v2493_v61  ;;  %2197 = vmatprep.subr.bf16.mxu1 %v2494_v0  ;;  %v2876_v61 = vpack.c.bf16 %v2787_v25, %v2741_v8  ;;  %v2901_v8 = vpack.c.bf16 %v2825_v41, %v2804_v33  ;;  %v2526_v11 = vld [vmem:[%s2995_s3 + $0xd8] sm:$0xff]   ;;  %v764_v25 = vpack.c.bf16 %v2893_v5, %v2823_v40 }
  0x31   : > { %2293 = vmatprep.subr.bf16.mxu0 %v2495_v9  ;;  %2207 = vmatprep.mubr.bf16.mxu1 %v328_v12  ;;  %v2527_v12 = vld [vmem:[%s2995_s3 + $0x1d8] sm:$0xff]  }
  0x32   : > { %2303 = vmatprep.mubr.bf16.mxu0 %v1061_v13  ;;  %v761_v13 = vpack.c.bf16 %v2780_v22, %v2735_v4  ;;  %v2530_v4 = vld [vmem:[%s2995_s3 + $0xe8] sm:$0xff]   ;;  %v763_v22 = vpack.c.bf16 %v2821_v39, %v2796_v29  ;;  %v1511_v29 = vld [vmem:[#allocation2 + $0x92] sm:$0xff] }
  0x33   : > { %2198 = vmatpush3.bf16.msra.mxu1 %v2494_v0  ;;  %v2886_v0 = vpack.c.bf16 %v2800_v31, %v2792_v27  ;;  %v2542_v27 = vld [vmem:[%s2995_s3 + $0x230] sm:$0xff]  }
  0x34   : > { %2294 = vmatpush3.bf16.msra.mxu0 %v2495_v9  ;;  %2199 = vmatprep.subr.bf16.mxu1 %v2496_v14  ;;  %v1215_v9 = vpack.c.bf16 %v2552_v3, %v2893_v5  ;;  %v2528_v3 = vld [vmem:[%s2995_s3 + $0xe0] sm:$0xff]  }
  0x35   : > { %2295 = vmatprep.subr.bf16.mxu0 %v2497_v15 }
  0x37   : > { %2200 = vmatpush3.bf16.msra.mxu1 %v2496_v14  ;;  %v2529_v14 = vld [vmem:[%s2995_s3 + $0x1e0] sm:$0xff]  }
  0x38   : > { %2296 = vmatpush3.bf16.msra.mxu0 %v2497_v15  ;;  %2201 = vmatprep.subr.bf16.mxu1 %v2498_v16  ;;  %v2531_v15 = vld [vmem:[%s2995_s3 + $0x1e8] sm:$0xff]  }
  0x39   : > { %2297 = vmatprep.subr.bf16.mxu0 %v2499_v17 }
  0x3b   : > { %2202 = vmatpush3.bf16.msra.mxu1 %v2498_v16  ;;  %v2532_v16 = vld [vmem:[%s2995_s3 + $0xf0] sm:$0xff]  }
  0x3c   : > { %2298 = vmatpush3.bf16.msra.mxu0 %v2499_v17  ;;  %2203 = vmatprep.subr.bf16.mxu1 %v2500_v18  ;;  %v2534_v17 = vld [vmem:[%s2995_s3 + $0xf8] sm:$0xff]  }
  0x3d   : > { %2299 = vmatprep.subr.bf16.mxu0 %v2501_v19 }
  0x3f   : > { %2204 = vmatpush3.bf16.msra.mxu1 %v2500_v18  ;;  %v2535_v18 = vld [vmem:[%s2995_s3 + $0x1f8] sm:$0xff]  }
  0x40   : > { %2300 = vmatpush3.bf16.msra.mxu0 %v2501_v19  ;;  %2205 = vmatprep.subr.bf16.mxu1 %v2502_v20  ;;  %v2536_v19 = vld [vmem:[%s2995_s3 + $0x200] sm:$0xff]  }
  0x41   : > { %2301 = vmatprep.subr.bf16.mxu0 %v2503_v21 }
  0x43   : > { %2206 = vmatpush3.bf16.msra.mxu1 %v2502_v20  ;;  %v762_v20 = vpack.c.bf16 %v2794_v28, %v2782_v23  ;;  %v2538_v23 = vld [vmem:[%s2995_s3 + $0x210] sm:$0xff]   ;;  %v2543_v28 = vld [vmem:[%s2995_s3 + $0x238] sm:$0xff]  }
  0x44   : > { %2302 = vmatpush3.bf16.msra.mxu0 %v2503_v21  ;;  %2215 = vmatprep.subr.bf16.mxu1 %v2504_v24  ;;  %v2537_v21 = vld [vmem:[%s2995_s3 + $0x208] sm:$0xff]  }
  0x45   : > { %2311 = vmatprep.subr.bf16.mxu0 %v2505_v26 }
  0x46   : > { %2208 = vmatmul.mubr.bf16.vlgmr.msra.gmra.mrb[0].mxu1 %v329_v30 }
  0x47   : > { %2216 = vmatpush3.bf16.msra.mxu1 %v2504_v24  ;;  %2304 = vmatmul.mubr.bf16.vlgmr.msra.gmra.mrb[0].mxu0 %v1062_v32  ;;  %v1361_v24 = vld [vmem:[#allocation2 + $0x91] sm:$0xff] }
  0x48   : > { %2312 = vmatpush3.bf16.msra.mxu0 %v2505_v26  ;;  %2217 = vmatprep.subr.bf16.mxu1 %v2506_v34  ;;  %v1365_v26 = vpack.c.bf16 %v1361_v24, %v2737_v6  ;;  %v2541_v6 = vld [vmem:[%s2995_s3 + $0x228] sm:$0xff]  }
  0x49   : > { %2313 = vmatprep.subr.bf16.mxu0 %v2507_v35  ;;  %2211 = vmatprep.mubr.bf16.mxu1 %v2814_v36 }
  0x4a   : > { %2307 = vmatprep.mubr.bf16.mxu0 %v1063_v38 }
  0x4b   : > { %2218 = vmatpush3.bf16.msra.mxu1 %v2506_v34 }
  0x4c   : > { %2314 = vmatpush3.bf16.msra.mxu0 %v2507_v35  ;;  %2219 = vmatprep.subr.bf16.mxu1 %v2508_v37 }
  0x4d   : > { %2315 = vmatprep.subr.bf16.mxu0 %v2509_v44 }
  0x4e   : > { %2212 = vmatmul.mubr.bf16.gmra.mrb[4].mxu1 %v331_v45 }
  0x4f   : > { %2220 = vmatpush3.bf16.msra.mxu1 %v2508_v37  ;;  %2308 = vmatmul.mubr.bf16.gmra.mrb[4].mxu0 %v1064_v47 }
  0x50   : > { %2316 = vmatpush3.bf16.msra.mxu0 %v2509_v44  ;;  %2221 = vmatprep.subr.bf16.mxu1 %v2510_v48 }
  0x51   : > { %2317 = vmatprep.subr.bf16.mxu0 %v2511_v49  ;;  %2231 = vmatprep.mubr.bf16.mxu1 %v611_v50 }
  0x52   : > { %2327 = vmatprep.mubr.bf16.mxu0 %v329_v30  ;;  %v1515_v30 = vpack.c.bf16 %v1511_v29, %v2827_v42 }
  0x53   : > { %2222 = vmatpush3.bf16.msra.mxu1 %v2510_v48 }
  0x54   : > { %2318 = vmatpush3.bf16.msra.mxu0 %v2511_v49  ;;  %2223 = vmatprep.subr.bf16.mxu1 %v2512_v51 }
  0x55   : > { %2319 = vmatprep.subr.bf16.mxu0 %v2513_v52 }
  0x57   : > { %2224 = vmatpush3.bf16.msra.mxu1 %v2512_v51 }
  0x58   : > { %2320 = vmatpush3.bf16.msra.mxu0 %v2513_v52  ;;  %2225 = vmatprep.subr.bf16.mxu1 %v2514_v53 }
  0x59   : > { %2321 = vmatprep.subr.bf16.mxu0 %v2515_v54 }
  0x5b   : > { %2226 = vmatpush3.bf16.msra.mxu1 %v2514_v53 }
  0x5c   : > { %2322 = vmatpush3.bf16.msra.mxu0 %v2515_v54  ;;  %2227 = vmatprep.subr.bf16.mxu1 %v2516_v55 }
  0x5d   : > { %2323 = vmatprep.subr.bf16.mxu0 %v2517_v56 }
  0x5f   : > { %2228 = vmatpush3.bf16.msra.mxu1 %v2516_v55 }
  0x60   : > { %2324 = vmatpush3.bf16.msra.mxu0 %v2517_v56  ;;  %2229 = vmatprep.subr.bf16.mxu1 %v2518_v57 }
  0x61   : > { %2325 = vmatprep.subr.bf16.mxu0 %v2519_v58 }
  0x63   : > { %2230 = vmatpush3.bf16.msra.mxu1 %v2518_v57 }
  0x64   : > { %2326 = vmatpush3.bf16.msra.mxu0 %v2519_v58  ;;  %2239 = vmatprep.subr.bf16.mxu1 %v2520_v59 }
  0x65   : > { %2335 = vmatprep.subr.bf16.mxu0 %v2521_v60 }
  0x66   : > { %2232 = vmatmul.mubr.bf16.vlgmr.msra.gmra.mrb[0].mxu1 %v2876_v61 }
  0x67   : > { %2240 = vmatpush3.bf16.msra.mxu1 %v2520_v59  ;;  %2328 = vmatmul.mubr.bf16.vlgmr.msra.gmra.mrb[0].mxu0 %v2814_v36 }
  0x68   : > { %2336 = vmatpush3.bf16.msra.mxu0 %v2521_v60  ;;  %2241 = vmatprep.subr.bf16.mxu1 %v2522_v62 }
  0x69   : > { %2337 = vmatprep.subr.bf16.mxu0 %v2523_v63  ;;  %2235 = vmatprep.mubr.bf16.mxu1 %v2886_v0 }
  0x6a   : > { %2331 = vmatprep.mubr.bf16.mxu0 %v331_v45 }
  0x6b   : > { %2242 = vmatpush3.bf16.msra.mxu1 %v2522_v62 }
  0x6c   : > { %2338 = vmatpush3.bf16.msra.mxu0 %v2523_v63  ;;  %2243 = vmatprep.subr.bf16.mxu1 %v2524_v2 }
  0x6d   : > { %2339 = vmatprep.subr.bf16.mxu0 %v2525_v7 }
  0x6e   : > { %2236 = vmatmul.mubr.bf16.gmra.mrb[4].mxu1 %v2901_v8 }
  0x6f   : > { %2244 = vmatpush3.bf16.msra.mxu1 %v2524_v2  ;;  %2332 = vmatmul.mubr.bf16.gmra.mrb[4].mxu0 %v1215_v9 }
  0x70   : > { %2340 = vmatpush3.bf16.msra.mxu0 %v2525_v7  ;;  %2245 = vmatprep.subr.bf16.mxu1 %v2526_v11 }
  0x71   : > { %2341 = vmatprep.subr.bf16.mxu0 %v2527_v12  ;;  %2255 = vmatprep.mubr.bf16.mxu1 %v761_v13 }
  0x72   : > { %2351 = vmatprep.mubr.bf16.mxu0 %v2706_v43  ;;  %v2533_v43 = vld [vmem:[%s2995_s3 + $0x1f0] sm:$0xff]  }
  0x73   : > { %2246 = vmatpush3.bf16.msra.mxu1 %v2526_v11 }
  0x74   : > { %2342 = vmatpush3.bf16.msra.mxu0 %v2527_v12  ;;  %2247 = vmatprep.subr.bf16.mxu1 %v2528_v3 }
  0x75   : > { %2343 = vmatprep.subr.bf16.mxu0 %v2529_v14 }
  0x77   : > { %2248 = vmatpush3.bf16.msra.mxu1 %v2528_v3 }
  0x78   : > { %2344 = vmatpush3.bf16.msra.mxu0 %v2529_v14  ;;  %2249 = vmatprep.subr.bf16.mxu1 %v2530_v4 }
  0x79   : > { %2345 = vmatprep.subr.bf16.mxu0 %v2531_v15 }
  0x7b   : > { %2250 = vmatpush3.bf16.msra.mxu1 %v2530_v4 }
  0x7c   : > { %2346 = vmatpush3.bf16.msra.mxu0 %v2531_v15  ;;  %2251 = vmatprep.subr.bf16.mxu1 %v2532_v16 }
  0x7d   : > { %2347 = vmatprep.subr.bf16.mxu0 %v2533_v43 }
  0x7f   : > { %2252 = vmatpush3.bf16.msra.mxu1 %v2532_v16 }
  0x80   : > { %2348 = vmatpush3.bf16.msra.mxu0 %v2533_v43  ;;  %2253 = vmatprep.subr.bf16.mxu1 %v2534_v17 }
  0x81   : > { %2349 = vmatprep.subr.bf16.mxu0 %v2535_v18 }
  0x83   : > { %2254 = vmatpush3.bf16.msra.mxu1 %v2534_v17 }
  0x84   : > { %2350 = vmatpush3.bf16.msra.mxu0 %v2535_v18  ;;  %2383 = vmatprep.subr.bf16.mxu1 %v2536_v19 }
  0x85   : > { %2359 = vmatprep.subr.bf16.mxu0 %v2536_v19 }
  0x86   : > { %2256 = vmatmul.mubr.bf16.vlgmr.msra.gmra.mrb[0].mxu1 %v762_v20 }
  0x87   : > { %2352 = vmatmul.mubr.bf16.vlgmr.msra.gmra.mrb[0].mxu0 %v2733_v1  ;;  %2391 = vmatpush3.bf16.msra.mxu1 %v2536_v19  ;;  %v2539_v1 = vld [vmem:[%s2995_s3 + $0x218] sm:$0xff]  }
  0x88   : > { %2360 = vmatpush3.bf16.msra.mxu0 %v2536_v19  ;;  %2384 = vmatprep.subr.bf16.mxu1 %v2537_v21 }
  0x89   : > { %2361 = vmatprep.subr.bf16.mxu0 %v2537_v21  ;;  %2259 = vmatprep.mubr.bf16.mxu1 %v763_v22 }
  0x8a   : > { %2355 = vmatprep.mubr.bf16.mxu0 %v2747_v10  ;;  %v2540_v10 = vld [vmem:[%s2995_s3 + $0x220] sm:$0xff]  }
  0x8b   : > { %2392 = vmatpush3.bf16.msra.mxu1 %v2537_v21 }
  0x8c   : > { %2362 = vmatpush3.bf16.msra.mxu0 %v2537_v21  ;;  %2385 = vmatprep.subr.bf16.mxu1 %v2538_v23 }
  0x8d   : > { %2363 = vmatprep.subr.bf16.mxu0 %v2538_v23 }
  0x8e   : > { %2260 = vmatmul.mubr.bf16.gmra.mrb[4].mxu1 %v764_v25 }
  0x8f   : > { %2356 = vmatmul.mubr.bf16.gmra.mrb[4].mxu0 %v1365_v26  ;;  %2393 = vmatpush3.bf16.msra.mxu1 %v2538_v23 }
  0x90   : > { %2364 = vmatpush3.bf16.msra.mxu0 %v2538_v23  ;;  %2386 = vmatprep.subr.bf16.mxu1 %v2539_v1 }
  0x91   : > { %2365 = vmatprep.subr.bf16.mxu0 %v2539_v1  ;;  %2375 = vmatprep.mubr.bf16.mxu0 %v2876_v61 }
  0x92   : > { %2379 = vmatprep.mubr.bf16.mxu1 %v2901_v8 }
  0x93   : > { %2394 = vmatpush3.bf16.msra.mxu1 %v2539_v1 }
  0x94   : > { %2366 = vmatpush3.bf16.msra.mxu0 %v2539_v1  ;;  %2387 = vmatprep.subr.bf16.mxu1 %v2540_v10 }
  0x95   : > { %2367 = vmatprep.subr.bf16.mxu0 %v2540_v10 }
  0x97   : > { %2395 = vmatpush3.bf16.msra.mxu1 %v2540_v10 }
  0x98   : > { %2368 = vmatpush3.bf16.msra.mxu0 %v2540_v10  ;;  %2388 = vmatprep.subr.bf16.mxu1 %v2541_v6 }
  0x99   : > { %2369 = vmatprep.subr.bf16.mxu0 %v2541_v6 }
  0x9b   : > { %2396 = vmatpush3.bf16.msra.mxu1 %v2541_v6 }
  0x9c   : > { %2370 = vmatpush3.bf16.msra.mxu0 %v2541_v6  ;;  %2389 = vmatprep.subr.bf16.mxu1 %v2542_v27 }
  0x9d   : > { %2371 = vmatprep.subr.bf16.mxu0 %v2542_v27 }
  0x9f   : > { %2397 = vmatpush3.bf16.msra.mxu1 %v2542_v27 }
  0xa0   : > { %2372 = vmatpush3.bf16.msra.mxu0 %v2542_v27  ;;  %2390 = vmatprep.subr.bf16.mxu1 %v2543_v28 }
  0xa1   : > { %2373 = vmatprep.subr.bf16.mxu0 %v2543_v28 }
  0xa3   : > { %2398 = vmatpush3.bf16.msra.mxu1 %v2543_v28 }
  0xa4   : > { %2374 = vmatpush3.bf16.msra.mxu0 %v2543_v28 }
  0xa6   : > { %2380 = vmatmul.mubr.bf16.vlgmr.msra.gmra.mrb[8].mxu1 %v1515_v30 }
  0xa7   : > { %2376 = vmatmul.mubr.bf16.vlgmr.msra.gmra.mrb[0].mxu0 %v2886_v0 }
 0x159   : > { %v2257_v31 = vpop.f32.mrb[0].mxu1 }
 0x15a   : > { %v864_v32 = vpop.f32.mrb[1].mxu1 }
 0x15b   : > { %v2258_v33 = vpop.f32.mrb[2].mxu1 }
 0x15c   : > { %v867_v34 = vpop.f32.mrb[3].mxu1 }
 0x161   : > { %v2261_v35 = vpop.f32.mrb[4].mxu1 }
 0x162   : > { %v2357_v36 = vpop.f32.mrb[4].mxu0  ;;  %v880_v37 = vpop.f32.mrb[5].mxu1 }
 0x163   : > { %v2403_v38 = vadd.f32 %v2357_v36, %v2261_v35  ;;  %v1481_v39 = vpop.f32.mrb[5].mxu0  ;;  %v2262_v40 = vpop.f32.mrb[6].mxu1 }
 0x164   : > { %v2405_v41 = vadd.f32 %v1481_v39, %v880_v37  ;;  %v2358_v44 = vpop.f32.mrb[6].mxu0  ;;  %v883_v45 = vpop.f32.mrb[7].mxu1 }
 0x165   : > { %v2407_v42 = vadd.f32 %v2358_v44, %v2262_v40  ;;  %v1484_v46 = vpop.f32.mrb[7].mxu0 }
 0x166   : > { %v2409_v47 = vadd.f32 %v1484_v46, %v883_v45 }
 0x179   : > { %v2381_v48 = vpop.f32.mrb[8].mxu1 }
 0x17a   : > { %v2377_v49 = vpop.f32.mrb[0].mxu0  ;;  %v2404_v50 = vadd.f32 %v2403_v38, %v2381_v48  ;;  %v1631_v51 = vpop.f32.mrb[9].mxu1 }
 0x17b   : > { %v2399_v52 = vadd.f32 %v2377_v49, %v2257_v31  ;;  %v1615_v53 = vpop.f32.mrb[1].mxu0  ;;  %v2406_v54 = vadd.f32 %v2405_v41, %v1631_v51  ;;  %v2382_v55 = vpop.f32.mrb[10].mxu1 }
 0x17c   : > { %v2400_v56 = vadd.f32 %v1615_v53, %v864_v32  ;;  %v2378_v57 = vpop.f32.mrb[2].mxu0  ;;  %v2408_v58 = vadd.f32 %v2407_v42, %v2382_v55  ;;  %v1634_v59 = vpop.f32.mrb[11].mxu1 }
 0x17d   : > { %v2401_v60 = vadd.f32 %v2378_v57, %v2258_v33  ;;  %v1618_v61 = vpop.f32.mrb[3].mxu0  ;;  %v2410_v62 = vadd.f32 %v2409_v47, %v1634_v59 }
 0x17e   : > { %v2051_v63 = vpack.c.bf16 %v2408_v58, %v2404_v50  ;;  %v2402_v0 = vadd.f32 %v1618_v61, %v867_v34 }
 0x17f   : > { %v2041_v2 = vpack.c.bf16 %v2401_v60, %v2399_v52  ;;  %v2046_v5 = vpack.c.bf16 %v2410_v62, %v2406_v54 }
 0x180   : > { %2058 = vst [vmem:[%s231_s20 + $0x18] sm:$0xff] %v2051_v63   ;;  %v2036_v7 = vpack.c.bf16 %v2402_v0, %v2400_v56  ;;  %v1670_v8 = vadd.f32 %v2402_v0, %v2400_v56 }
 0x181   : > { %2056 = vst [vmem:[%s231_s20 + $0x8] sm:$0xff] %v2041_v2   ;;  %2057 = vst [vmem:[%s231_s20 + $0x10] sm:$0xff] %v2046_v5  }
 0x182   : > { %2037 = vst [vmem:[%s231_s20] sm:$0xff] %v2036_v7   ;;  %v1671_v9 = vadd.f32 %v2399_v52, %v1670_v8 }
 0x184   : > { %v1672_v11 = vadd.f32 %v2401_v60, %v1671_v9 }
 0x186   : > { %v1673_v12 = vadd.f32 %v2406_v54, %v1672_v11 }
 0x188   : > { %v1674_v13 = vadd.f32 %v2410_v62, %v1673_v12 }
 0x18a   : > { %v1675_v3 = vadd.f32 %v2404_v50, %v1674_v13 }
 0x18c   : > { %v1676_v14 = vadd.f32 %v2408_v58, %v1675_v3 }
 0x18e   : > { %v1677_v4 = vrot.slane %v1676_v14, 4 }
 0x190   : > { %v1678_v15 = vadd.f32 %v1677_v4, %v1676_v14 }
 0x192   : > { %v1679_v16 = vrot.slane %v1678_v15, 2 }
 0x194   : > { %v1680_v43 = vadd.f32 %v1679_v16, %v1678_v15 }
 0x196   : > { %v1681_v17 = vrot.slane %v1680_v43, 1 }
 0x198   : > { %v1682_v18 = vadd.f32 %v1681_v17, %v1680_v43 }
 0x19a   : > { %v1683_v19 = vmul.f32 0.015625, %v1682_v18  ;;  %1692 = vst [vmem:[%s2985_s24] sm:$0x1] %v1682_v18 }
 0x19c   : > { %v1684_v20 = vsub.f32 %v2400_v56, %v1683_v19  ;;  %v1685_v21 = vsub.f32 %v2402_v0, %v1683_v19  ;;  %v1686_v22 = vsub.f32 %v2399_v52, %v1683_v19  ;;  %v1687_v24 = vsub.f32 %v2401_v60, %v1683_v19 }
 0x19d   : > { %v1688_v23 = vsub.f32 %v2406_v54, %v1683_v19  ;;  %v1689_v25 = vsub.f32 %v2410_v62, %v1683_v19  ;;  %v1690_v26 = vsub.f32 %v2404_v50, %v1683_v19  ;;  %v1691_v1 = vsub.f32 %v2408_v58, %v1683_v19 }
 0x19e   : > { %v1693_v10 = vmul.f32 %v1684_v20, %v1684_v20  ;;  %v1694_v6 = vmul.f32 %v1685_v21, %v1685_v21  ;;  %v1695_v27 = vmul.f32 %v1686_v22, %v1686_v22  ;;  %v1696_v29 = vmul.f32 %v1687_v24, %v1687_v24 }
 0x19f   : > { %v1697_v31 = vmul.f32 %v1688_v23, %v1688_v23  ;;  %v1698_v33 = vmul.f32 %v1689_v25, %v1689_v25  ;;  %v1699_v35 = vmul.f32 %v1690_v26, %v1690_v26  ;;  %v1700_v37 = vmul.f32 %v1691_v1, %v1691_v1 }
 0x1a0   : > { %v1701_v28 = vadd.f32 %v1694_v6, %v1693_v10 }
 0x1a2   : > { %v1702_v30 = vadd.f32 %v1701_v28, %v1695_v27 }
 0x1a4   : > { %v1703_v32 = vadd.f32 %v1702_v30, %v1696_v29 }
 0x1a6   : > { %v1704_v34 = vadd.f32 %v1703_v32, %v1697_v31 }
 0x1a8   : > { %v1705_v36 = vadd.f32 %v1704_v34, %v1698_v33 }
 0x1aa   : > { %v1706_v38 = vadd.f32 %v1705_v36, %v1699_v35 }
 0x1ac   : > { %v1707_v39 = vadd.f32 %v1706_v38, %v1700_v37 }
 0x1ae   : > { %v1708_v40 = vrot.slane %v1707_v39, 4 }
 0x1b0   : > { %v1709_v41 = vadd.f32 %v1708_v40, %v1707_v39 }
 0x1b2   : > { %v1710_v44 = vrot.slane %v1709_v41, 2 }
 0x1b4   : > { %v1711_v45 = vadd.f32 %v1710_v44, %v1709_v41 }
 0x1b6   : > { %v1712_v42 = vrot.slane %v1711_v45, 1 }
 0x1b8   : > { %v1713_v46 = vadd.f32 %v1712_v42, %v1711_v45 }
 0x1ba   : > { %1714 = vst [vmem:[%s2985_s24 + $0x1] sm:$0x1] %v1713_v46 }
 0x1bb PF: > { %s16_s18 = sadd.s32 1, %s2550_s18  }
 0x1bc   : > { %p13_p4 = scmp.ge.s32.totalorder %s16_s18, 4  }
 0x1be   :  { %15 = sbr.rel (!%p13_p4) target bundleno = 1 (0x1), region = 88 }

</bundles_post_ra>
